<compile_context>
chip_gen: v7x
topology: tpu7x:2x2x1
jax: 0.10.0
libtpu: 0.0.40
codegen_flags: <defaults>
</compile_context>

<pallas_src>
import functools

import jax
import jax.numpy as jnp
from jax.experimental import pallas as pl
from jax.experimental.pallas import tpu as pltpu


def _round_up(x, m):
    return ((x + m - 1) // m) * m


# ---------------------------------------------------------------------------
# Fused encoder kernel: Conv1D -> Dropout(0.0) -> GRU -> SelfAttention
# ---------------------------------------------------------------------------
def encoder_kernel(slab_ref, cw_ref, cb_ref, wih_ref, bih_ref, whh_ref, bhh_ref,
                   aw_ref, abw_ref, au_ref, abu_ref, o_ref, gates_ref, gru_ref,
                   *, t_out, batch, hp):
    """
    slab_ref : (T_out*B, K*F)  im2col'd speech, rows t-major (row = t*B + b)
    cw_ref   : (K*F, C)        conv weight, rows ordered (tap, feature)
    cb_ref   : (1, C)
    wih_ref  : (C, 3*Hp)       GRU input weights; gates r|z|n in 128-lane blocks
    bih_ref  : (1, 3*Hp)
    whh_ref  : (Hp, 3*Hp)      GRU recurrent weights (rows zero-padded H -> Hp)
    bhh_ref  : (1, 3*Hp)
    aw_ref   : (Hp, A), abw_ref: (1, A), au_ref: (1, A), abu_ref: (1, 1)
    o_ref    : (B, Hp)         attention-pooled output (real data in lanes [0, H))
    gates_ref: VMEM scratch (T_out, B, 3*Hp)   -- hoisted input projection
    gru_ref  : VMEM scratch (T_out, B, Hp)     -- GRU hidden states, stays on chip
    """
    B, Hp = batch, hp

    # --- Stage 1: 1-D conv == ONE 2-D matmul on the wrapper-side im2col slab --
    conv = jnp.dot(slab_ref[...], cw_ref[...],
                   preferred_element_type=jnp.float32) + cb_ref[...]        # (T*B, C)
    # Dropout(p=0.0) is the identity.

    # --- Stage 2 prologue: hoisted, time-independent GRU input projection ----
    gates = jnp.dot(conv, wih_ref[...],
                    preferred_element_type=jnp.float32) + bih_ref[...]      # (T*B, 3Hp)
    gates_ref[...] = gates.reshape(t_out, B, 3 * Hp)    # leading-axis indexable per step

    w_hh = whh_ref[...]                                                      # (Hp, 3Hp)
    b_hh = bhh_ref[...]                                                      # (1, 3Hp)

    # --- Stage 2: serial GRU recurrence (statically unrolled, T_out is small) --
    # Padded lanes [H, Hp) stay exactly 0 in h by construction (zero-padded
    # weights/biases), so no masking is needed anywhere in the loop.
    h = jnp.zeros((B, Hp), jnp.float32)
    for t in range(t_out):
        # TODO(synk): hold w_hh in MXU staging regs (matmul_push_rhs/acc_lhs/pop)
        # across the unrolled steps instead of re-pushing the RHS every step.
        gh = jnp.dot(h, w_hh, preferred_element_type=jnp.float32) + b_hh     # (B, 3Hp)
        gx = gates_ref[t]                                                    # (B, 3Hp)
        s = gx + gh
        rz = jax.nn.sigmoid(s[:, 0:2 * Hp])      # fused sigmoid over aligned r|z blocks
        r = rz[:, 0:Hp]
        z = rz[:, Hp:2 * Hp]
        n = jnp.tanh(gx[:, 2 * Hp:3 * Hp] + r * gh[:, 2 * Hp:3 * Hp])
        h = (1.0 - z) * n + z * h
        gru_ref[t] = h                                                       # stays in VMEM

    # --- Stage 3: self-attention ---------------------------------------------
    xs = gru_ref[...]                                    # (T, B, Hp)
    xs2 = xs.reshape(t_out * B, Hp)                      # 2-D slab for the MXU
    hid = jnp.tanh(jnp.dot(xs2, aw_ref[...],
                           preferred_element_type=jnp.float32) + abw_ref[...])  # (T*B, A)
    hid3 = hid.reshape(t_out, B, hid.shape[-1])          # (T, B, A)
    # Scores via VPU broadcast-multiply + lane reduction (avoid N=1 MXU matmul).
    sc = jnp.sum(hid3 * au_ref[...], axis=-1, keepdims=True) + abu_ref[...]  # (T, B, 1)
    m = jnp.max(sc, axis=0, keepdims=True)
    e = jnp.exp(sc - m)
    alpha = e / jnp.sum(e, axis=0, keepdims=True)        # exact divide (tight vs ref)
    o_ref[...] = jnp.sum(alpha * xs, axis=0).astype(o_ref.dtype)             # (B, Hp)


# ---------------------------------------------------------------------------
# Wrapper: wrapper-side im2col + parameter repacking + one pallas_call
# ---------------------------------------------------------------------------
_VMEM = pl.BlockSpec(memory_space=pltpu.MemorySpace.VMEM)


@functools.partial(jax.jit, static_argnames=("stride", "filter_length"))
def encoder_forward(speech, params, *, stride, filter_length):
    B, T, F = speech.shape
    K = filter_length
    H = params['w_hh'].shape[2]
    A = params['attn_w'].shape[1]
    C = params['conv_w'].shape[2]
    t_out = (T - K) // stride + 1
    Hp = _round_up(H, 128)                    # 128-lane-aligned gate / hidden blocks

    # --- im2col in the wrapper (pure layout plumbing, XLA slices) -------------
    # Row order is t-major (row = t*B + b) so the kernel can reshape to
    # (T_out, B, .) with a leading-dim split only.
    cols = [speech[:, k: k + (t_out - 1) * stride + 1: stride, :] for k in range(K)]
    slab = jnp.concatenate(cols, axis=-1)                  # (B, T_out, K*F), lane = k*F+f
    slab = slab.transpose(1, 0, 2).reshape(t_out * B, K * F)

    conv_w2 = params['conv_w'].reshape(K * F, C)           # rows ordered (tap, feature)
    conv_b2 = params['conv_b'].reshape(1, C)

    # --- GRU gate repacking: r|z|n blocks, each zero-padded to Hp lanes -------
    def pad_cols(w):                                       # (..., H) -> (..., Hp)
        return jnp.pad(w, [(0, 0)] * (w.ndim - 1) + [(0, Hp - H)])

    w_ih_p = jnp.concatenate([pad_cols(params['w_ih'][g]) for g in range(3)], axis=1)  # (C, 3Hp)
    b_ih_p = jnp.concatenate([pad_cols(params['b_ih'][g]) for g in range(3)], axis=1)  # (1, 3Hp)
    w_hh_p = jnp.concatenate(
        [jnp.pad(params['w_hh'][g], ((0, Hp - H), (0, Hp - H))) for g in range(3)],
        axis=1)                                                                        # (Hp, 3Hp)
    b_hh_p = jnp.concatenate([pad_cols(params['b_hh'][g]) for g in range(3)], axis=1)  # (1, 3Hp)
    attn_w_p = jnp.pad(params['attn_w'], ((0, Hp - H), (0, 0)))                        # (Hp, A)
    attn_u_row = params['attn_u'].reshape(1, A)                                        # (1, A)

    kernel = functools.partial(encoder_kernel, t_out=t_out, batch=B, hp=Hp)
    out_padded = pl.pallas_call(
        kernel,
        out_shape=jax.ShapeDtypeStruct((B, Hp), jnp.float32),
        in_specs=[_VMEM] * 11,
        out_specs=_VMEM,
        scratch_shapes=[pltpu.VMEM((t_out, B, 3 * Hp), jnp.float32),
                        pltpu.VMEM((t_out, B, Hp), jnp.float32)],
    )(slab, conv_w2, conv_b2, w_ih_p, b_ih_p, w_hh_p, b_hh_p,
      attn_w_p, params['attn_bw'], attn_u_row, params['attn_bu'])
    return out_padded[:, :H]


# ---------------------------------------------------------------------------
# Pure-JAX reference (same math, unpadded) for a correctness check.
# ---------------------------------------------------------------------------
def reference_forward(speech, params, *, stride, filter_length):
    B, T, _ = speech.shape
    K = filter_length
    t_out = (T - K) // stride + 1
    conv = jnp.zeros((B, t_out, params['conv_w'].shape[2]), jnp.float32) + params['conv_b']
    for k in range(K):
        xk = speech[:, k: k + (t_out - 1) * stride + 1: stride, :]
        conv = conv + jnp.einsum('btf,fc->btc', xk, params['conv_w'][k])
    H = params['w_hh'].shape[2]
    h = jnp.zeros((B, H), jnp.float32)
    outs = []
    for t in range(t_out):
        x_t = conv[:, t, :]
        r = jax.nn.sigmoid(x_t @ params['w_ih'][0] + params['b_ih'][0]
                           + h @ params['w_hh'][0] + params['b_hh'][0])
        z = jax.nn.sigmoid(x_t @ params['w_ih'][1] + params['b_ih'][1]
                           + h @ params['w_hh'][1] + params['b_hh'][1])
        n = jnp.tanh(x_t @ params['w_ih'][2] + params['b_ih'][2]
                     + r * (h @ params['w_hh'][2] + params['b_hh'][2]))
        h = (1.0 - z) * n + z * h
        outs.append(h)
    out = jnp.stack(outs, axis=1)                                       # (B, T_out, H)
    e = jnp.tanh(out @ params['attn_w'] + params['attn_bw']) @ params['attn_u'] + params['attn_bu']
    alpha = jax.nn.softmax(e, axis=1)
    return jnp.sum(alpha * out, axis=1)


if __name__ == "__main__":
    # Module hyperparameters (small, consistent with Encoder defaults scaled down)
    size_feature = 12      # F
    size = 32              # GRU hidden H
    filter_length = 6
    filter_size = 64       # conv output channels C
    stride = 2
    size_attn = 64         # attention projection A

    B, T = 2, 20           # batch, input time steps -> T_out = (20-6)//2 + 1 = 8

    key = jax.random.PRNGKey(0)
    ks = jax.random.split(key, 11)
    s = 0.1
    params = {
        'conv_w':  jax.random.normal(ks[0], (filter_length, size_feature, filter_size), jnp.float32) * s,
        'conv_b':  jax.random.normal(ks[1], (1, 1, filter_size), jnp.float32) * s,
        'w_ih':    jax.random.normal(ks[2], (3, filter_size, size), jnp.float32) * s,
        'w_hh':    jax.random.normal(ks[3], (3, size, size), jnp.float32) * s,
        'b_ih':    jax.random.normal(ks[4], (3, 1, size), jnp.float32) * s,
        'b_hh':    jax.random.normal(ks[5], (3, 1, size), jnp.float32) * s,
        'attn_w':  jax.random.normal(ks[6], (size, size_attn), jnp.float32) * s,
        'attn_bw': jax.random.normal(ks[7], (1, size_attn), jnp.float32) * s,
        'attn_u':  jax.random.normal(ks[8], (size_attn, 1), jnp.float32) * s,
        'attn_bu': jax.random.normal(ks[9], (1, 1), jnp.float32) * s,
    }
    speech = jax.random.normal(ks[10], (B, T, size_feature), jnp.float32)

    out = encoder_forward(speech, params, stride=stride, filter_length=filter_length)
    out = jax.block_until_ready(out)
    assert out.shape == (B, size), out.shape

    ref = reference_forward(speech, params, stride=stride, filter_length=filter_length)
    # Exact softmax divide now -> tight tolerance.
    assert jnp.allclose(out, ref, atol=1e-4, rtol=1e-4), float(jnp.max(jnp.abs(out - ref)))

    print("KERNEL_OK")
</pallas_src>

<mosaic_0001>
module attributes {stable_mosaic.version = 11 : i64} {
  func.func @encoder_kernel(%arg0: memref<16x72xf32, #tpu.memory_space<vmem>>, %arg1: memref<72x64xf32, #tpu.memory_space<vmem>>, %arg2: memref<1x64xf32, #tpu.memory_space<vmem>>, %arg3: memref<64x384xf32, #tpu.memory_space<vmem>>, %arg4: memref<1x384xf32, #tpu.memory_space<vmem>>, %arg5: memref<128x384xf32, #tpu.memory_space<vmem>>, %arg6: memref<1x384xf32, #tpu.memory_space<vmem>>, %arg7: memref<128x64xf32, #tpu.memory_space<vmem>>, %arg8: memref<1x64xf32, #tpu.memory_space<vmem>>, %arg9: memref<1x64xf32, #tpu.memory_space<vmem>>, %arg10: memref<1x1xf32, #tpu.memory_space<vmem>>, %arg11: memref<2x128xf32, #tpu.memory_space<vmem>>, %arg12: memref<8x2x384xf32, #tpu.memory_space<vmem>>, %arg13: memref<8x2x128xf32, #tpu.memory_space<vmem>>) attributes {dimension_semantics = [], scalar_prefetch = 0 : i64, scratch_operands = 2 : i64, tpu.core_type = #tpu.core_type<tc>} {
    %c0 = arith.constant 0 : index
    %c0_0 = arith.constant 0 : index
    %0 = vector.load %arg0[%c0, %c0_0] : memref<16x72xf32, #tpu.memory_space<vmem>>, vector<16x72xf32>
    %c0_1 = arith.constant 0 : index
    %c0_2 = arith.constant 0 : index
    %1 = vector.load %arg1[%c0_1, %c0_2] : memref<72x64xf32, #tpu.memory_space<vmem>>, vector<72x64xf32>
    %cst = arith.constant dense<0.000000e+00> : vector<16x64xf32>
    %2 = tpu.matmul %0, %1, %cst {dimension_numbers = #tpu.dot_dimension_numbers<[1], [0], [0], [1], [0, 0, 1, 1], [], []>} : vector<16x72xf32>, vector<72x64xf32>, vector<16x64xf32> -> vector<16x64xf32>
    %c0_3 = arith.constant 0 : index
    %c0_4 = arith.constant 0 : index
    %3 = vector.load %arg2[%c0_3, %c0_4] : memref<1x64xf32, #tpu.memory_space<vmem>>, vector<1x64xf32>
    %4 = vector.broadcast %3 : vector<1x64xf32> to vector<16x64xf32>
    %5 = arith.addf %2, %4 : vector<16x64xf32>
    %c0_5 = arith.constant 0 : index
    %c0_6 = arith.constant 0 : index
    %6 = vector.load %arg3[%c0_5, %c0_6] : memref<64x384xf32, #tpu.memory_space<vmem>>, vector<64x384xf32>
    %cst_7 = arith.constant dense<0.000000e+00> : vector<16x384xf32>
    %7 = tpu.matmul %5, %6, %cst_7 {dimension_numbers = #tpu.dot_dimension_numbers<[1], [0], [0], [1], [0, 0, 1, 1], [], []>} : vector<16x64xf32>, vector<64x384xf32>, vector<16x384xf32> -> vector<16x384xf32>
    %c0_8 = arith.constant 0 : index
    %c0_9 = arith.constant 0 : index
    %8 = vector.load %arg4[%c0_8, %c0_9] : memref<1x384xf32, #tpu.memory_space<vmem>>, vector<1x384xf32>
    %9 = vector.broadcast %8 : vector<1x384xf32> to vector<16x384xf32>
    %10 = arith.addf %7, %9 : vector<16x384xf32>
    %11 = vector.shape_cast %10 : vector<16x384xf32> to vector<8x2x384xf32>
    %c0_10 = arith.constant 0 : index
    %c0_11 = arith.constant 0 : index
    %c0_12 = arith.constant 0 : index
    %12 = vector.load %arg12[%c0_10, %c0_11, %c0_12] : memref<8x2x384xf32, #tpu.memory_space<vmem>>, vector<8x2x384xf32>
    tpu.vector_store %arg12[%c0_10, %c0_11, %c0_12], %11 {strides = array<i32>} : memref<8x2x384xf32, #tpu.memory_space<vmem>>, vector<8x2x384xf32>,
    %c0_13 = arith.constant 0 : index
    %c0_14 = arith.constant 0 : index
    %13 = vector.load %arg5[%c0_13, %c0_14] : memref<128x384xf32, #tpu.memory_space<vmem>>, vector<128x384xf32>
    %c0_15 = arith.constant 0 : index
    %c0_16 = arith.constant 0 : index
    %14 = vector.load %arg6[%c0_15, %c0_16] : memref<1x384xf32, #tpu.memory_space<vmem>>, vector<1x384xf32>
    %cst_17 = arith.constant 0.000000e+00 : f32
    %15 = vector.broadcast %cst_17 : f32 to vector<2x128xf32>
    %cst_18 = arith.constant dense<0.000000e+00> : vector<2x384xf32>
    %16 = tpu.matmul %15, %13, %cst_18 {dimension_numbers = #tpu.dot_dimension_numbers<[1], [0], [0], [1], [0, 0, 1, 1], [], []>} : vector<2x128xf32>, vector<128x384xf32>, vector<2x384xf32> -> vector<2x384xf32>
    %17 = vector.broadcast %14 : vector<1x384xf32> to vector<2x384xf32>
    %18 = arith.addf %16, %17 : vector<2x384xf32>
    %c0_19 = arith.constant 0 : index
    %c0_20 = arith.constant 0 : index
    %c0_21 = arith.constant 0 : index
    %19 = vector.load %arg12[%c0_19, %c0_20, %c0_21] : memref<8x2x384xf32, #tpu.memory_space<vmem>>, vector<1x2x384xf32>
    %20 = vector.shape_cast %19 : vector<1x2x384xf32> to vector<2x384xf32>
    %21 = arith.addf %20, %18 : vector<2x384xf32>
    %22 = vector.extract_strided_slice %21 {offsets = [0, 0], sizes = [2, 256], strides = [1, 1]} : vector<2x384xf32> to vector<2x256xf32>
    %23 = arith.negf %22 : vector<2x256xf32>
    %24 = math.exp %23 : vector<2x256xf32>
    %cst_22 = arith.constant 1.000000e+00 : f32
    %25 = vector.broadcast %cst_22 : f32 to vector<2x256xf32>
    %26 = arith.addf %25, %24 : vector<2x256xf32>
    %27 = arith.divf %25, %26 : vector<2x256xf32>
    %28 = vector.extract_strided_slice %27 {offsets = [0, 0], sizes = [2, 128], strides = [1, 1]} : vector<2x256xf32> to vector<2x128xf32>
    %29 = vector.extract_strided_slice %27 {offsets = [0, 128], sizes = [2, 128], strides = [1, 1]} : vector<2x256xf32> to vector<2x128xf32>
    %30 = vector.extract_strided_slice %20 {offsets = [0, 256], sizes = [2, 128], strides = [1, 1]} : vector<2x384xf32> to vector<2x128xf32>
    %31 = vector.extract_strided_slice %18 {offsets = [0, 256], sizes = [2, 128], strides = [1, 1]} : vector<2x384xf32> to vector<2x128xf32>
    %32 = arith.mulf %28, %31 : vector<2x128xf32>
    %33 = arith.addf %30, %32 : vector<2x128xf32>
    %34 = math.tanh %33 : vector<2x128xf32>
    %cst_23 = arith.constant 1.000000e+00 : f32
    %35 = vector.broadcast %cst_23 : f32 to vector<2x128xf32>
    %36 = arith.subf %35, %29 : vector<2x128xf32>
    %37 = arith.mulf %36, %34 : vector<2x128xf32>
    %38 = arith.mulf %29, %15 : vector<2x128xf32>
    %39 = arith.addf %37, %38 : vector<2x128xf32>
    %c0_24 = arith.constant 0 : index
    %c0_25 = arith.constant 0 : index
    %c0_26 = arith.constant 0 : index
    %40 = vector.load %arg13[%c0_24, %c0_25, %c0_26] : memref<8x2x128xf32, #tpu.memory_space<vmem>>, vector<1x2x128xf32>
    %41 = vector.shape_cast %40 : vector<1x2x128xf32> to vector<2x128xf32>
    %42 = vector.shape_cast %39 : vector<2x128xf32> to vector<1x2x128xf32>
    tpu.vector_store %arg13[%c0_24, %c0_25, %c0_26], %42 {strides = array<i32>} : memref<8x2x128xf32, #tpu.memory_space<vmem>>, vector<1x2x128xf32>,
    %cst_27 = arith.constant dense<0.000000e+00> : vector<2x384xf32>
    %43 = tpu.matmul %39, %13, %cst_27 {dimension_numbers = #tpu.dot_dimension_numbers<[1], [0], [0], [1], [0, 0, 1, 1], [], []>} : vector<2x128xf32>, vector<128x384xf32>, vector<2x384xf32> -> vector<2x384xf32>
    %44 = vector.broadcast %14 : vector<1x384xf32> to vector<2x384xf32>
    %45 = arith.addf %43, %44 : vector<2x384xf32>
    %c1 = arith.constant 1 : index
    %c0_28 = arith.constant 0 : index
    %c0_29 = arith.constant 0 : index
    %46 = vector.load %arg12[%c1, %c0_28, %c0_29] : memref<8x2x384xf32, #tpu.memory_space<vmem>>, vector<1x2x384xf32>
    %47 = vector.shape_cast %46 : vector<1x2x384xf32> to vector<2x384xf32>
    %48 = arith.addf %47, %45 : vector<2x384xf32>
    %49 = vector.extract_strided_slice %48 {offsets = [0, 0], sizes = [2, 256], strides = [1, 1]} : vector<2x384xf32> to vector<2x256xf32>
    %50 = arith.negf %49 : vector<2x256xf32>
    %51 = math.exp %50 : vector<2x256xf32>
    %cst_30 = arith.constant 1.000000e+00 : f32
    %52 = vector.broadcast %cst_30 : f32 to vector<2x256xf32>
    %53 = arith.addf %52, %51 : vector<2x256xf32>
    %54 = arith.divf %52, %53 : vector<2x256xf32>
    %55 = vector.extract_strided_slice %54 {offsets = [0, 0], sizes = [2, 128], strides = [1, 1]} : vector<2x256xf32> to vector<2x128xf32>
    %56 = vector.extract_strided_slice %54 {offsets = [0, 128], sizes = [2, 128], strides = [1, 1]} : vector<2x256xf32> to vector<2x128xf32>
    %57 = vector.extract_strided_slice %47 {offsets = [0, 256], sizes = [2, 128], strides = [1, 1]} : vector<2x384xf32> to vector<2x128xf32>
    %58 = vector.extract_strided_slice %45 {offsets = [0, 256], sizes = [2, 128], strides = [1, 1]} : vector<2x384xf32> to vector<2x128xf32>
    %59 = arith.mulf %55, %58 : vector<2x128xf32>
    %60 = arith.addf %57, %59 : vector<2x128xf32>
    %61 = math.tanh %60 : vector<2x128xf32>
    %cst_31 = arith.constant 1.000000e+00 : f32
    %62 = vector.broadcast %cst_31 : f32 to vector<2x128xf32>
    %63 = arith.subf %62, %56 : vector<2x128xf32>
    %64 = arith.mulf %63, %61 : vector<2x128xf32>
    %65 = arith.mulf %56, %39 : vector<2x128xf32>
    %66 = arith.addf %64, %65 : vector<2x128xf32>
    %c1_32 = arith.constant 1 : index
    %c0_33 = arith.constant 0 : index
    %c0_34 = arith.constant 0 : index
    %67 = vector.load %arg13[%c1_32, %c0_33, %c0_34] : memref<8x2x128xf32, #tpu.memory_space<vmem>>, vector<1x2x128xf32>
    %68 = vector.shape_cast %67 : vector<1x2x128xf32> to vector<2x128xf32>
    %69 = vector.shape_cast %66 : vector<2x128xf32> to vector<1x2x128xf32>
    tpu.vector_store %arg13[%c1_32, %c0_33, %c0_34], %69 {strides = array<i32>} : memref<8x2x128xf32, #tpu.memory_space<vmem>>, vector<1x2x128xf32>,
    %cst_35 = arith.constant dense<0.000000e+00> : vector<2x384xf32>
    %70 = tpu.matmul %66, %13, %cst_35 {dimension_numbers = #tpu.dot_dimension_numbers<[1], [0], [0], [1], [0, 0, 1, 1], [], []>} : vector<2x128xf32>, vector<128x384xf32>, vector<2x384xf32> -> vector<2x384xf32>
    %71 = vector.broadcast %14 : vector<1x384xf32> to vector<2x384xf32>
    %72 = arith.addf %70, %71 : vector<2x384xf32>
    %c2 = arith.constant 2 : index
    %c0_36 = arith.constant 0 : index
    %c0_37 = arith.constant 0 : index
    %73 = vector.load %arg12[%c2, %c0_36, %c0_37] : memref<8x2x384xf32, #tpu.memory_space<vmem>>, vector<1x2x384xf32>
    %74 = vector.shape_cast %73 : vector<1x2x384xf32> to vector<2x384xf32>
    %75 = arith.addf %74, %72 : vector<2x384xf32>
    %76 = vector.extract_strided_slice %75 {offsets = [0, 0], sizes = [2, 256], strides = [1, 1]} : vector<2x384xf32> to vector<2x256xf32>
    %77 = arith.negf %76 : vector<2x256xf32>
    %78 = math.exp %77 : vector<2x256xf32>
    %cst_38 = arith.constant 1.000000e+00 : f32
    %79 = vector.broadcast %cst_38 : f32 to vector<2x256xf32>
    %80 = arith.addf %79, %78 : vector<2x256xf32>
    %81 = arith.divf %79, %80 : vector<2x256xf32>
    %82 = vector.extract_strided_slice %81 {offsets = [0, 0], sizes = [2, 128], strides = [1, 1]} : vector<2x256xf32> to vector<2x128xf32>
    %83 = vector.extract_strided_slice %81 {offsets = [0, 128], sizes = [2, 128], strides = [1, 1]} : vector<2x256xf32> to vector<2x128xf32>
    %84 = vector.extract_strided_slice %74 {offsets = [0, 256], sizes = [2, 128], strides = [1, 1]} : vector<2x384xf32> to vector<2x128xf32>
    %85 = vector.extract_strided_slice %72 {offsets = [0, 256], sizes = [2, 128], strides = [1, 1]} : vector<2x384xf32> to vector<2x128xf32>
    %86 = arith.mulf %82, %85 : vector<2x128xf32>
    %87 = arith.addf %84, %86 : vector<2x128xf32>
    %88 = math.tanh %87 : vector<2x128xf32>
    %cst_39 = arith.constant 1.000000e+00 : f32
    %89 = vector.broadcast %cst_39 : f32 to vector<2x128xf32>
    %90 = arith.subf %89, %83 : vector<2x128xf32>
    %91 = arith.mulf %90, %88 : vector<2x128xf32>
    %92 = arith.mulf %83, %66 : vector<2x128xf32>
    %93 = arith.addf %91, %92 : vector<2x128xf32>
    %c2_40 = arith.constant 2 : index
    %c0_41 = arith.constant 0 : index
    %c0_42 = arith.constant 0 : index
    %94 = vector.load %arg13[%c2_40, %c0_41, %c0_42] : memref<8x2x128xf32, #tpu.memory_space<vmem>>, vector<1x2x128xf32>
    %95 = vector.shape_cast %94 : vector<1x2x128xf32> to vector<2x128xf32>
    %96 = vector.shape_cast %93 : vector<2x128xf32> to vector<1x2x128xf32>
    tpu.vector_store %arg13[%c2_40, %c0_41, %c0_42], %96 {strides = array<i32>} : memref<8x2x128xf32, #tpu.memory_space<vmem>>, vector<1x2x128xf32>,
    %cst_43 = arith.constant dense<0.000000e+00> : vector<2x384xf32>
    %97 = tpu.matmul %93, %13, %cst_43 {dimension_numbers = #tpu.dot_dimension_numbers<[1], [0], [0], [1], [0, 0, 1, 1], [], []>} : vector<2x128xf32>, vector<128x384xf32>, vector<2x384xf32> -> vector<2x384xf32>
    %98 = vector.broadcast %14 : vector<1x384xf32> to vector<2x384xf32>
    %99 = arith.addf %97, %98 : vector<2x384xf32>
    %c3 = arith.constant 3 : index
    %c0_44 = arith.constant 0 : index
    %c0_45 = arith.constant 0 : index
    %100 = vector.load %arg12[%c3, %c0_44, %c0_45] : memref<8x2x384xf32, #tpu.memory_space<vmem>>, vector<1x2x384xf32>
    %101 = vector.shape_cast %100 : vector<1x2x384xf32> to vector<2x384xf32>
    %102 = arith.addf %101, %99 : vector<2x384xf32>
    %103 = vector.extract_strided_slice %102 {offsets = [0, 0], sizes = [2, 256], strides = [1, 1]} : vector<2x384xf32> to vector<2x256xf32>
    %104 = arith.negf %103 : vector<2x256xf32>
    %105 = math.exp %104 : vector<2x256xf32>
    %cst_46 = arith.constant 1.000000e+00 : f32
    %106 = vector.broadcast %cst_46 : f32 to vector<2x256xf32>
    %107 = arith.addf %106, %105 : vector<2x256xf32>
    %108 = arith.divf %106, %107 : vector<2x256xf32>
    %109 = vector.extract_strided_slice %108 {offsets = [0, 0], sizes = [2, 128], strides = [1, 1]} : vector<2x256xf32> to vector<2x128xf32>
    %110 = vector.extract_strided_slice %108 {offsets = [0, 128], sizes = [2, 128], strides = [1, 1]} : vector<2x256xf32> to vector<2x128xf32>
    %111 = vector.extract_strided_slice %101 {offsets = [0, 256], sizes = [2, 128], strides = [1, 1]} : vector<2x384xf32> to vector<2x128xf32>
    %112 = vector.extract_strided_slice %99 {offsets = [0, 256], sizes = [2, 128], strides = [1, 1]} : vector<2x384xf32> to vector<2x128xf32>
    %113 = arith.mulf %109, %112 : vector<2x128xf32>
    %114 = arith.addf %111, %113 : vector<2x128xf32>
    %115 = math.tanh %114 : vector<2x128xf32>
    %cst_47 = arith.constant 1.000000e+00 : f32
    %116 = vector.broadcast %cst_47 : f32 to vector<2x128xf32>
    %117 = arith.subf %116, %110 : vector<2x128xf32>
    %118 = arith.mulf %117, %115 : vector<2x128xf32>
    %119 = arith.mulf %110, %93 : vector<2x128xf32>
    %120 = arith.addf %118, %119 : vector<2x128xf32>
    %c3_48 = arith.constant 3 : index
    %c0_49 = arith.constant 0 : index
    %c0_50 = arith.constant 0 : index
    %121 = vector.load %arg13[%c3_48, %c0_49, %c0_50] : memref<8x2x128xf32, #tpu.memory_space<vmem>>, vector<1x2x128xf32>
    %122 = vector.shape_cast %121 : vector<1x2x128xf32> to vector<2x128xf32>
    %123 = vector.shape_cast %120 : vector<2x128xf32> to vector<1x2x128xf32>
    tpu.vector_store %arg13[%c3_48, %c0_49, %c0_50], %123 {strides = array<i32>} : memref<8x2x128xf32, #tpu.memory_space<vmem>>, vector<1x2x128xf32>,
    %cst_51 = arith.constant dense<0.000000e+00> : vector<2x384xf32>
    %124 = tpu.matmul %120, %13, %cst_51 {dimension_numbers = #tpu.dot_dimension_numbers<[1], [0], [0], [1], [0, 0, 1, 1], [], []>} : vector<2x128xf32>, vector<128x384xf32>, vector<2x384xf32> -> vector<2x384xf32>
    %125 = vector.broadcast %14 : vector<1x384xf32> to vector<2x384xf32>
    %126 = arith.addf %124, %125 : vector<2x384xf32>
    %c4 = arith.constant 4 : index
    %c0_52 = arith.constant 0 : index
    %c0_53 = arith.constant 0 : index
    %127 = vector.load %arg12[%c4, %c0_52, %c0_53] : memref<8x2x384xf32, #tpu.memory_space<vmem>>, vector<1x2x384xf32>
    %128 = vector.shape_cast %127 : vector<1x2x384xf32> to vector<2x384xf32>
    %129 = arith.addf %128, %126 : vector<2x384xf32>
    %130 = vector.extract_strided_slice %129 {offsets = [0, 0], sizes = [2, 256], strides = [1, 1]} : vector<2x384xf32> to vector<2x256xf32>
    %131 = arith.negf %130 : vector<2x256xf32>
    %132 = math.exp %131 : vector<2x256xf32>
    %cst_54 = arith.constant 1.000000e+00 : f32
    %133 = vector.broadcast %cst_54 : f32 to vector<2x256xf32>
    %134 = arith.addf %133, %132 : vector<2x256xf32>
    %135 = arith.divf %133, %134 : vector<2x256xf32>
    %136 = vector.extract_strided_slice %135 {offsets = [0, 0], sizes = [2, 128], strides = [1, 1]} : vector<2x256xf32> to vector<2x128xf32>
    %137 = vector.extract_strided_slice %135 {offsets = [0, 128], sizes = [2, 128], strides = [1, 1]} : vector<2x256xf32> to vector<2x128xf32>
    %138 = vector.extract_strided_slice %128 {offsets = [0, 256], sizes = [2, 128], strides = [1, 1]} : vector<2x384xf32> to vector<2x128xf32>
    %139 = vector.extract_strided_slice %126 {offsets = [0, 256], sizes = [2, 128], strides = [1, 1]} : vector<2x384xf32> to vector<2x128xf32>
    %140 = arith.mulf %136, %139 : vector<2x128xf32>
    %141 = arith.addf %138, %140 : vector<2x128xf32>
    %142 = math.tanh %141 : vector<2x128xf32>
    %cst_55 = arith.constant 1.000000e+00 : f32
    %143 = vector.broadcast %cst_55 : f32 to vector<2x128xf32>
    %144 = arith.subf %143, %137 : vector<2x128xf32>
    %145 = arith.mulf %144, %142 : vector<2x128xf32>
    %146 = arith.mulf %137, %120 : vector<2x128xf32>
    %147 = arith.addf %145, %146 : vector<2x128xf32>
    %c4_56 = arith.constant 4 : index
    %c0_57 = arith.constant 0 : index
    %c0_58 = arith.constant 0 : index
    %148 = vector.load %arg13[%c4_56, %c0_57, %c0_58] : memref<8x2x128xf32, #tpu.memory_space<vmem>>, vector<1x2x128xf32>
    %149 = vector.shape_cast %148 : vector<1x2x128xf32> to vector<2x128xf32>
    %150 = vector.shape_cast %147 : vector<2x128xf32> to vector<1x2x128xf32>
    tpu.vector_store %arg13[%c4_56, %c0_57, %c0_58], %150 {strides = array<i32>} : memref<8x2x128xf32, #tpu.memory_space<vmem>>, vector<1x2x128xf32>,
    %cst_59 = arith.constant dense<0.000000e+00> : vector<2x384xf32>
    %151 = tpu.matmul %147, %13, %cst_59 {dimension_numbers = #tpu.dot_dimension_numbers<[1], [0], [0], [1], [0, 0, 1, 1], [], []>} : vector<2x128xf32>, vector<128x384xf32>, vector<2x384xf32> -> vector<2x384xf32>
    %152 = vector.broadcast %14 : vector<1x384xf32> to vector<2x384xf32>
    %153 = arith.addf %151, %152 : vector<2x384xf32>
    %c5 = arith.constant 5 : index
    %c0_60 = arith.constant 0 : index
    %c0_61 = arith.constant 0 : index
    %154 = vector.load %arg12[%c5, %c0_60, %c0_61] : memref<8x2x384xf32, #tpu.memory_space<vmem>>, vector<1x2x384xf32>
    %155 = vector.shape_cast %154 : vector<1x2x384xf32> to vector<2x384xf32>
    %156 = arith.addf %155, %153 : vector<2x384xf32>
    %157 = vector.extract_strided_slice %156 {offsets = [0, 0], sizes = [2, 256], strides = [1, 1]} : vector<2x384xf32> to vector<2x256xf32>
    %158 = arith.negf %157 : vector<2x256xf32>
    %159 = math.exp %158 : vector<2x256xf32>
    %cst_62 = arith.constant 1.000000e+00 : f32
    %160 = vector.broadcast %cst_62 : f32 to vector<2x256xf32>
    %161 = arith.addf %160, %159 : vector<2x256xf32>
    %162 = arith.divf %160, %161 : vector<2x256xf32>
    %163 = vector.extract_strided_slice %162 {offsets = [0, 0], sizes = [2, 128], strides = [1, 1]} : vector<2x256xf32> to vector<2x128xf32>
    %164 = vector.extract_strided_slice %162 {offsets = [0, 128], sizes = [2, 128], strides = [1, 1]} : vector<2x256xf32> to vector<2x128xf32>
    %165 = vector.extract_strided_slice %155 {offsets = [0, 256], sizes = [2, 128], strides = [1, 1]} : vector<2x384xf32> to vector<2x128xf32>
    %166 = vector.extract_strided_slice %153 {offsets = [0, 256], sizes = [2, 128], strides = [1, 1]} : vector<2x384xf32> to vector<2x128xf32>
    %167 = arith.mulf %163, %166 : vector<2x128xf32>
    %168 = arith.addf %165, %167 : vector<2x128xf32>
    %169 = math.tanh %168 : vector<2x128xf32>
    %cst_63 = arith.constant 1.000000e+00 : f32
    %170 = vector.broadcast %cst_63 : f32 to vector<2x128xf32>
    %171 = arith.subf %170, %164 : vector<2x128xf32>
    %172 = arith.mulf %171, %169 : vector<2x128xf32>
    %173 = arith.mulf %164, %147 : vector<2x128xf32>
    %174 = arith.addf %172, %173 : vector<2x128xf32>
    %c5_64 = arith.constant 5 : index
    %c0_65 = arith.constant 0 : index
    %c0_66 = arith.constant 0 : index
    %175 = vector.load %arg13[%c5_64, %c0_65, %c0_66] : memref<8x2x128xf32, #tpu.memory_space<vmem>>, vector<1x2x128xf32>
    %176 = vector.shape_cast %175 : vector<1x2x128xf32> to vector<2x128xf32>
    %177 = vector.shape_cast %174 : vector<2x128xf32> to vector<1x2x128xf32>
    tpu.vector_store %arg13[%c5_64, %c0_65, %c0_66], %177 {strides = array<i32>} : memref<8x2x128xf32, #tpu.memory_space<vmem>>, vector<1x2x128xf32>,
    %cst_67 = arith.constant dense<0.000000e+00> : vector<2x384xf32>
    %178 = tpu.matmul %174, %13, %cst_67 {dimension_numbers = #tpu.dot_dimension_numbers<[1], [0], [0], [1], [0, 0, 1, 1], [], []>} : vector<2x128xf32>, vector<128x384xf32>, vector<2x384xf32> -> vector<2x384xf32>
    %179 = vector.broadcast %14 : vector<1x384xf32> to vector<2x384xf32>
    %180 = arith.addf %178, %179 : vector<2x384xf32>
    %c6 = arith.constant 6 : index
    %c0_68 = arith.constant 0 : index
    %c0_69 = arith.constant 0 : index
    %181 = vector.load %arg12[%c6, %c0_68, %c0_69] : memref<8x2x384xf32, #tpu.memory_space<vmem>>, vector<1x2x384xf32>
    %182 = vector.shape_cast %181 : vector<1x2x384xf32> to vector<2x384xf32>
    %183 = arith.addf %182, %180 : vector<2x384xf32>
    %184 = vector.extract_strided_slice %183 {offsets = [0, 0], sizes = [2, 256], strides = [1, 1]} : vector<2x384xf32> to vector<2x256xf32>
    %185 = arith.negf %184 : vector<2x256xf32>
    %186 = math.exp %185 : vector<2x256xf32>
    %cst_70 = arith.constant 1.000000e+00 : f32
    %187 = vector.broadcast %cst_70 : f32 to vector<2x256xf32>
    %188 = arith.addf %187, %186 : vector<2x256xf32>
    %189 = arith.divf %187, %188 : vector<2x256xf32>
    %190 = vector.extract_strided_slice %189 {offsets = [0, 0], sizes = [2, 128], strides = [1, 1]} : vector<2x256xf32> to vector<2x128xf32>
    %191 = vector.extract_strided_slice %189 {offsets = [0, 128], sizes = [2, 128], strides = [1, 1]} : vector<2x256xf32> to vector<2x128xf32>
    %192 = vector.extract_strided_slice %182 {offsets = [0, 256], sizes = [2, 128], strides = [1, 1]} : vector<2x384xf32> to vector<2x128xf32>
    %193 = vector.extract_strided_slice %180 {offsets = [0, 256], sizes = [2, 128], strides = [1, 1]} : vector<2x384xf32> to vector<2x128xf32>
    %194 = arith.mulf %190, %193 : vector<2x128xf32>
    %195 = arith.addf %192, %194 : vector<2x128xf32>
    %196 = math.tanh %195 : vector<2x128xf32>
    %cst_71 = arith.constant 1.000000e+00 : f32
    %197 = vector.broadcast %cst_71 : f32 to vector<2x128xf32>
    %198 = arith.subf %197, %191 : vector<2x128xf32>
    %199 = arith.mulf %198, %196 : vector<2x128xf32>
    %200 = arith.mulf %191, %174 : vector<2x128xf32>
    %201 = arith.addf %199, %200 : vector<2x128xf32>
    %c6_72 = arith.constant 6 : index
    %c0_73 = arith.constant 0 : index
    %c0_74 = arith.constant 0 : index
    %202 = vector.load %arg13[%c6_72, %c0_73, %c0_74] : memref<8x2x128xf32, #tpu.memory_space<vmem>>, vector<1x2x128xf32>
    %203 = vector.shape_cast %202 : vector<1x2x128xf32> to vector<2x128xf32>
    %204 = vector.shape_cast %201 : vector<2x128xf32> to vector<1x2x128xf32>
    tpu.vector_store %arg13[%c6_72, %c0_73, %c0_74], %204 {strides = array<i32>} : memref<8x2x128xf32, #tpu.memory_space<vmem>>, vector<1x2x128xf32>,
    %cst_75 = arith.constant dense<0.000000e+00> : vector<2x384xf32>
    %205 = tpu.matmul %201, %13, %cst_75 {dimension_numbers = #tpu.dot_dimension_numbers<[1], [0], [0], [1], [0, 0, 1, 1], [], []>} : vector<2x128xf32>, vector<128x384xf32>, vector<2x384xf32> -> vector<2x384xf32>
    %206 = vector.broadcast %14 : vector<1x384xf32> to vector<2x384xf32>
    %207 = arith.addf %205, %206 : vector<2x384xf32>
    %c7 = arith.constant 7 : index
    %c0_76 = arith.constant 0 : index
    %c0_77 = arith.constant 0 : index
    %208 = vector.load %arg12[%c7, %c0_76, %c0_77] : memref<8x2x384xf32, #tpu.memory_space<vmem>>, vector<1x2x384xf32>
    %209 = vector.shape_cast %208 : vector<1x2x384xf32> to vector<2x384xf32>
    %210 = arith.addf %209, %207 : vector<2x384xf32>
    %211 = vector.extract_strided_slice %210 {offsets = [0, 0], sizes = [2, 256], strides = [1, 1]} : vector<2x384xf32> to vector<2x256xf32>
    %212 = arith.negf %211 : vector<2x256xf32>
    %213 = math.exp %212 : vector<2x256xf32>
    %cst_78 = arith.constant 1.000000e+00 : f32
    %214 = vector.broadcast %cst_78 : f32 to vector<2x256xf32>
    %215 = arith.addf %214, %213 : vector<2x256xf32>
    %216 = arith.divf %214, %215 : vector<2x256xf32>
    %217 = vector.extract_strided_slice %216 {offsets = [0, 0], sizes = [2, 128], strides = [1, 1]} : vector<2x256xf32> to vector<2x128xf32>
    %218 = vector.extract_strided_slice %216 {offsets = [0, 128], sizes = [2, 128], strides = [1, 1]} : vector<2x256xf32> to vector<2x128xf32>
    %219 = vector.extract_strided_slice %209 {offsets = [0, 256], sizes = [2, 128], strides = [1, 1]} : vector<2x384xf32> to vector<2x128xf32>
    %220 = vector.extract_strided_slice %207 {offsets = [0, 256], sizes = [2, 128], strides = [1, 1]} : vector<2x384xf32> to vector<2x128xf32>
    %221 = arith.mulf %217, %220 : vector<2x128xf32>
    %222 = arith.addf %219, %221 : vector<2x128xf32>
    %223 = math.tanh %222 : vector<2x128xf32>
    %cst_79 = arith.constant 1.000000e+00 : f32
    %224 = vector.broadcast %cst_79 : f32 to vector<2x128xf32>
    %225 = arith.subf %224, %218 : vector<2x128xf32>
    %226 = arith.mulf %225, %223 : vector<2x128xf32>
    %227 = arith.mulf %218, %201 : vector<2x128xf32>
    %228 = arith.addf %226, %227 : vector<2x128xf32>
    %c7_80 = arith.constant 7 : index
    %c0_81 = arith.constant 0 : index
    %c0_82 = arith.constant 0 : index
    %229 = vector.load %arg13[%c7_80, %c0_81, %c0_82] : memref<8x2x128xf32, #tpu.memory_space<vmem>>, vector<1x2x128xf32>
    %230 = vector.shape_cast %229 : vector<1x2x128xf32> to vector<2x128xf32>
    %231 = vector.shape_cast %228 : vector<2x128xf32> to vector<1x2x128xf32>
    tpu.vector_store %arg13[%c7_80, %c0_81, %c0_82], %231 {strides = array<i32>} : memref<8x2x128xf32, #tpu.memory_space<vmem>>, vector<1x2x128xf32>,
    %c0_83 = arith.constant 0 : index
    %c0_84 = arith.constant 0 : index
    %c0_85 = arith.constant 0 : index
    %232 = vector.load %arg13[%c0_83, %c0_84, %c0_85] : memref<8x2x128xf32, #tpu.memory_space<vmem>>, vector<8x2x128xf32>
    %233 = vector.shape_cast %232 : vector<8x2x128xf32> to vector<16x128xf32>
    %c0_86 = arith.constant 0 : index
    %c0_87 = arith.constant 0 : index
    %234 = vector.load %arg7[%c0_86, %c0_87] : memref<128x64xf32, #tpu.memory_space<vmem>>, vector<128x64xf32>
    %cst_88 = arith.constant dense<0.000000e+00> : vector<16x64xf32>
    %235 = tpu.matmul %233, %234, %cst_88 {dimension_numbers = #tpu.dot_dimension_numbers<[1], [0], [0], [1], [0, 0, 1, 1], [], []>} : vector<16x128xf32>, vector<128x64xf32>, vector<16x64xf32> -> vector<16x64xf32>
    %c0_89 = arith.constant 0 : index
    %c0_90 = arith.constant 0 : index
    %236 = vector.load %arg8[%c0_89, %c0_90] : memref<1x64xf32, #tpu.memory_space<vmem>>, vector<1x64xf32>
    %237 = vector.broadcast %236 : vector<1x64xf32> to vector<16x64xf32>
    %238 = arith.addf %235, %237 : vector<16x64xf32>
    %239 = math.tanh %238 : vector<16x64xf32>
    %240 = vector.shape_cast %239 : vector<16x64xf32> to vector<8x2x64xf32>
    %c0_91 = arith.constant 0 : index
    %c0_92 = arith.constant 0 : index
    %241 = vector.load %arg9[%c0_91, %c0_92] : memref<1x64xf32, #tpu.memory_space<vmem>>, vector<1x64xf32>
    %242 = vector.shape_cast %241 : vector<1x64xf32> to vector<1x1x64xf32>
    %243 = vector.broadcast %242 : vector<1x1x64xf32> to vector<8x2x64xf32>
    %244 = arith.mulf %240, %243 : vector<8x2x64xf32>
    %cst_93 = arith.constant dense<0.000000e+00> : vector<8x2xf32>
    %245 = vector.multi_reduction <add>, %244, %cst_93 [2] : vector<8x2x64xf32> to vector<8x2xf32>
    %246 = vector.shape_cast %245 : vector<8x2xf32> to vector<8x2x1xf32>
    %c0_94 = arith.constant 0 : index
    %c0_95 = arith.constant 0 : index
    %247 = vector.load %arg10[%c0_94, %c0_95] : memref<1x1xf32, #tpu.memory_space<vmem>>, vector<1x1xf32>
    %248 = vector.shape_cast %247 : vector<1x1xf32> to vector<1x1x1xf32>
    %249 = vector.broadcast %248 : vector<1x1x1xf32> to vector<8x2x1xf32>
    %250 = arith.addf %246, %249 : vector<8x2x1xf32>
    %cst_96 = arith.constant dense<0xFF800000> : vector<2x1xf32>
    %251 = vector.multi_reduction <maximumf>, %250, %cst_96 [0] : vector<8x2x1xf32> to vector<2x1xf32>
    %252 = vector.shape_cast %251 : vector<2x1xf32> to vector<1x2x1xf32>
    %253 = vector.broadcast %252 : vector<1x2x1xf32> to vector<8x2x1xf32>
    %254 = arith.subf %250, %253 : vector<8x2x1xf32>
    %255 = math.exp %254 : vector<8x2x1xf32>
    %cst_97 = arith.constant dense<0.000000e+00> : vector<2x1xf32>
    %256 = vector.multi_reduction <add>, %255, %cst_97 [0] : vector<8x2x1xf32> to vector<2x1xf32>
    %257 = vector.shape_cast %256 : vector<2x1xf32> to vector<1x2x1xf32>
    %258 = vector.broadcast %257 : vector<1x2x1xf32> to vector<8x2x1xf32>
    %259 = arith.divf %255, %258 : vector<8x2x1xf32>
    %260 = vector.broadcast %259 : vector<8x2x1xf32> to vector<8x2x128xf32>
    %261 = arith.mulf %260, %232 : vector<8x2x128xf32>
    %cst_98 = arith.constant dense<0.000000e+00> : vector<2x128xf32>
    %262 = vector.multi_reduction <add>, %261, %cst_98 [0] : vector<8x2x128xf32> to vector<2x128xf32>
    %c0_99 = arith.constant 0 : index
    %c0_100 = arith.constant 0 : index
    %263 = vector.load %arg11[%c0_99, %c0_100] : memref<2x128xf32, #tpu.memory_space<vmem>>, vector<2x128xf32>
    tpu.vector_store %arg11[%c0_99, %c0_100], %262 {strides = array<i32>} : memref<2x128xf32, #tpu.memory_space<vmem>>, vector<2x128xf32>,
    return
  }
}

</mosaic_0001>

<bundles_post_ra>
// kernel: encoder_forward.1
= control target key start
LH: loop header
LB: loop body
LE: loop exit
PB: predicated region body
PF: predicated region fallthrough
CT: control target
= control target key end

     0   :  { %s4459_s0 = inlined_call_operand.vmem [shape: f32[16,72], index: 0, kind: input, shape index: {}]   ;;  %s4460_s1 = inlined_call_operand.vmem [shape: f32[72,64], index: 1, kind: input, shape index: {}]   ;;  %s4461_s2 = inlined_call_operand.vmem [shape: f32[1,64], index: 2, kind: input, shape index: {}]   ;;  %s4462_s3 = inlined_call_operand.vmem [shape: f32[64,384], index: 3, kind: input, shape index: {}]   ;;  %s4463_s4 = inlined_call_operand.vmem [shape: f32[1,384], index: 4, kind: input, shape index: {}]   ;;  %s4464_s5 = inlined_call_operand.vmem [shape: f32[128,384], index: 5, kind: input, shape index: {}]   ;;  %s4465_s6 = inlined_call_operand.vmem [shape: f32[1,384], index: 6, kind: input, shape index: {}]   ;;  %s4466_s7 = inlined_call_operand.vmem [shape: f32[128,64], index: 7, kind: input, shape index: {}]   ;;  %s4467_s8 = inlined_call_operand.vmem [shape: f32[1,64], index: 8, kind: input, shape index: {}]   ;;  %s4468_s9 = inlined_call_operand.vmem [shape: f32[1,64], index: 9, kind: input, shape index: {}]   ;;  %s4469_s10 = inlined_call_operand.<no memory space> [shape: f32[1,1], index: 10, kind: input, shape index: {}]   ;;  %s4470_s11 = inlined_call_operand.hbm [shape: f32[2,128], index: 11, kind: output, shape index: {}]  }
   0x1   :  { %v16_v0 = vstv %s4469_s10 }
   0x2   :  { %17 = vst [vmem:[#allocation4] sm:$0x1] %v16_v0 }
   0x3   :  { %v43_v1 = vld [vmem:[%s4460_s1] sm:$0xff]  ;;  %v44_v2 = vld [vmem:[%s4460_s1 + $0x8] sm:$0xff]  ;;  %v45_v3 = vld [vmem:[%s4460_s1 + $0x10] sm:$0xff]  ;;  %vm59_vm0 = vcmask 588800  }
   0x4   :  { %v2918_v4 = vpack.c.bf16 %v44_v2, %v43_v1  ;;  %v46_v5 = vld [vmem:[%s4460_s1 + $0x18] sm:$0xff]  ;;  %v47_v7 = vld [vmem:[%s4460_s1 + $0x20] sm:$0xff]  ;;  %v48_v8 = vld [vmem:[%s4460_s1 + $0x28] sm:$0xff] }
   0x5   :  { %v2922_v6 = vpack.c.bf16 %v46_v5, %v45_v3  ;;  %v41_v9 = vld [vmem:[%s4459_s0] sm:$0xff]  ;;  %v142_v10 = vld [vmem:[%s4462_s3 + $0x8] sm:$0xff]  ;;  %v49_v11 = vld [vmem:[%s4460_s1 + $0x30] sm:$0xff]  ;;  %v2926_v16 = vpack.c.bf16 %v48_v8, %v47_v7 }
   0x6   :  { %2919 = vmatprep.subr.bf16.mxu0 %v2918_v4  ;;  %v50_v12 = vld [vmem:[%s4460_s1 + $0x38] sm:$0xff]  ;;  %2581 = vmatprep.mubr.msk.f32.mxu0 %vm59_vm0, %v41_v9  ;;  %v145_v13 = vld [vmem:[%s4462_s3 + $0x20] sm:$0xff]  ;;  %v151_v20 = vld [vmem:[%s4462_s3 + $0x50] sm:$0xff] }
   0x7   :  { %2921 = vmatpush3.bf16.msra.mxu0 %v2918_v4  ;;  %v141_v14 = vld [vmem:[%s4462_s3] sm:$0xff]  ;;  %v144_v15 = vld [vmem:[%s4462_s3 + $0x18] sm:$0xff]  ;;  %v2934_v17 = vpack.c.bf16 %v145_v13, %v142_v10  ;;  %v147_v21 = vld [vmem:[%s4462_s3 + $0x30] sm:$0xff] }
   0x8   :  { %2923 = vmatprep.subr.bf16.mxu0 %v2922_v6  ;;  %v2936_v18 = vpack.c.bf16 %v144_v15, %v141_v14  ;;  %v148_v19 = vld [vmem:[%s4462_s3 + $0x38] sm:$0xff]  ;;  %v150_v23 = vld [vmem:[%s4462_s3 + $0x48] sm:$0xff]  ;;  %v157_v25 = vld [vmem:[%s4462_s3 + $0x80] sm:$0xff] }
   0x9   :  { %v2938_v22 = vpack.c.bf16 %v151_v20, %v148_v19  ;;  %v154_v24 = vld [vmem:[%s4462_s3 + $0x68] sm:$0xff]  ;;  %2935 = vmatprep.subr.bf16.mxu1 %v2934_v17  ;;  %v2940_v26 = vpack.c.bf16 %v150_v23, %v147_v21 }
   0xa   :  { %2937 = vmatpush1.bf16.msra.mxu1 %v2936_v18 }
   0xb   :  { %2925 = vmatpush3.bf16.msra.mxu0 %v2922_v6 }
   0xc   :  { %18 = vsyncpa [#allocation6], 0  ;;  %2927 = vmatprep.subr.bf16.mxu0 %v2926_v16  ;;  %v2930_v27 = vpack.c.bf16 %v50_v12, %v49_v11  ;;  %2939 = vmatprep.subr.bf16.mxu1 %v2938_v22  ;;  %v2942_v28 = vpack.c.bf16 %v157_v25, %v154_v24  ;;  %v153_v29 = vld [vmem:[%s4462_s3 + $0x60] sm:$0xff]  ;;  %v156_v30 = vld [vmem:[%s4462_s3 + $0x78] sm:$0xff]  ;;  %v3548_v43 = vmov 0.0   ;;  %vm182_vm1 = vcmask 523264  }
   0xd   :  { %v160_v31 = vld [vmem:[%s4462_s3 + $0x98] sm:$0xff]  ;;  %v163_v32 = vld [vmem:[%s4462_s3 + $0xb0] sm:$0xff]  ;;  %v2944_v33 = vpack.c.bf16 %v156_v30, %v153_v29  ;;  %v51_v35 = vld [vmem:[%s4460_s1 + $0x40] sm:$0xff]  ;;  %253 = vmatprep.mubr.f32.mxu1 %v3548_v43  ;;  %vm3550_vm2 = vmmov 0   ;;  %vm2187_vm3 = vcmask 517120   ;;  %vm2227_vm4 = vcmask 1024  }
   0xe   :  { %2941 = vmatpush1.bf16.msra.mxu1 %v2940_v26  ;;  %v2946_v34 = vpack.c.bf16 %v163_v32, %v160_v31  ;;  %v42_v36 = vld [vmem:[%s4459_s0 + $0x8] sm:$0xff]  ;;  %v159_v37 = vld [vmem:[%s4462_s3 + $0x90] sm:$0xff]  ;;  %v437_v45 = vld [vmem:[%s4464_s5 + $0x20] sm:$0xff]  ;;  %vm2339_vm5 = vcmask 1041408  }
   0xf   :  { %2929 = vmatpush3.bf16.msra.mxu0 %v2926_v16  ;;  %2943 = vmatprep.subr.bf16.mxu1 %v2942_v28  ;;  %v162_v38 = vld [vmem:[%s4462_s3 + $0xa8] sm:$0xff]  ;;  %v143_v40 = vld [vmem:[%s4462_s3 + $0x10] sm:$0xff]  ;;  %v433_v46 = vld [vmem:[%s4464_s5] sm:$0xff] }
  0x10   :  { %2931 = vmatprep.subr.bf16.mxu0 %v2930_v27  ;;  %v2948_v39 = vpack.c.bf16 %v162_v38, %v159_v37  ;;  %v146_v41 = vld [vmem:[%s4462_s3 + $0x28] sm:$0xff]  ;;  %v436_v47 = vld [vmem:[%s4464_s5 + $0x18] sm:$0xff]  ;;  %v443_v51 = vld [vmem:[%s4464_s5 + $0x50] sm:$0xff] }
  0x11   :  { %v3706_v42 = vpack.c.bf16 %v146_v41, %v143_v40  ;;  %v434_v44 = vld [vmem:[%s4464_s5 + $0x8] sm:$0xff]  ;;  %v3725_v49 = vpack.c.bf16 %v436_v47, %v433_v46  ;;  %v440_v50 = vld [vmem:[%s4464_s5 + $0x38] sm:$0xff]  ;;  %v439_v53 = vld [vmem:[%s4464_s5 + $0x30] sm:$0xff]  ;;  %v3549_v46 = vmov 0.0|0.0  }
  0x12   :  { %2945 = vmatpush1.bf16.msra.mxu1 %v2944_v33  ;;  %v3723_v48 = vpack.c.bf16 %v437_v45, %v434_v44  ;;  %v3735_v52 = vpack.c.bf16 %v443_v51, %v440_v50  ;;  %v442_v54 = vld [vmem:[%s4464_s5 + $0x48] sm:$0xff]  ;;  %v449_v57 = vld [vmem:[%s4464_s5 + $0x80] sm:$0xff]  ;;  %v448_v60 = vld [vmem:[%s4464_s5 + $0x78] sm:$0xff] }
  0x13   :  { %2933 = vmatpush3.bf16.msra.mxu0 %v2930_v27  ;;  %2947 = vmatprep.subr.bf16.mxu1 %v2946_v34  ;;  %v3743_v55 = vpack.c.bf16 %v442_v54, %v439_v53  ;;  %v446_v56 = vld [vmem:[%s4464_s5 + $0x68] sm:$0xff]  ;;  %v445_v59 = vld [vmem:[%s4464_s5 + $0x60] sm:$0xff]  ;;  %v452_v62 = vld [vmem:[%s4464_s5 + $0x98] sm:$0xff] }
  0x14   :  { %2579 = vmatprep.subr.mxu0 %v51_v35  ;;  %v3753_v58 = vpack.c.bf16 %v449_v57, %v446_v56  ;;  %v3761_v61 = vpack.c.bf16 %v448_v60, %v445_v59  ;;  %v455_v63 = vld [vmem:[%s4464_s5 + $0xb0] sm:$0xff]  ;;  %v454_v2 = vld [vmem:[%s4464_s5 + $0xa8] sm:$0xff]  ;;  %v461_v5 = vld [vmem:[%s4464_s5 + $0xe0] sm:$0xff] }
  0x15   :  { %v3771_v0 = vpack.c.bf16 %v455_v63, %v452_v62  ;;  %v451_v1 = vld [vmem:[%s4464_s5 + $0x90] sm:$0xff]  ;;  %v458_v4 = vld [vmem:[%s4464_s5 + $0xc8] sm:$0xff]  ;;  %v457_v7 = vld [vmem:[%s4464_s5 + $0xc0] sm:$0xff] }
  0x16   :  { %2949 = vmatpush1.bf16.msra.mxu1 %v2948_v39  ;;  %v3779_v3 = vpack.c.bf16 %v454_v2, %v451_v1  ;;  %v3789_v6 = vpack.c.bf16 %v461_v5, %v458_v4  ;;  %v460_v8 = vld [vmem:[%s4464_s5 + $0xd8] sm:$0xff]  ;;  %v467_v11 = vld [vmem:[%s4464_s5 + $0x110] sm:$0xff]  ;;  %v466_v14 = vld [vmem:[%s4464_s5 + $0x108] sm:$0xff] }
  0x17   :  { %2580 = vmatpush3.msra.mxu0 %v51_v35  ;;  %2951 = vmatprep.subr.bf16.mxu1 %v3706_v42  ;;  %v3797_v9 = vpack.c.bf16 %v460_v8, %v457_v7  ;;  %v464_v10 = vld [vmem:[%s4464_s5 + $0xf8] sm:$0xff]  ;;  %v463_v13 = vld [vmem:[%s4464_s5 + $0xf0] sm:$0xff]  ;;  %v470_v16 = vld [vmem:[%s4464_s5 + $0x128] sm:$0xff] }
  0x18   :  { %2582 = vmatmul.mubr.msk.f32.vlgmr.msra.gmra.mrb[0].mxu0 %vm59_vm0, %v42_v36  ;;  %2967 = vmatprep.subr.bf16.mxu0 %v3723_v48  ;;  %v3807_v12 = vpack.c.bf16 %v467_v11, %v464_v10  ;;  %v3815_v15 = vpack.c.bf16 %v466_v14, %v463_v13  ;;  %v473_v17 = vld [vmem:[%s4464_s5 + $0x140] sm:$0xff]  ;;  %v472_v20 = vld [vmem:[%s4464_s5 + $0x138] sm:$0xff]  ;;  %v479_v23 = vld [vmem:[%s4464_s5 + $0x170] sm:$0xff] }
  0x19   :  { %562 = vmatprep.mubr.f32.mxu0 %v3548_v43  ;;  %2969 = vmatpush1.bf16.msra.mxu0 %v3725_v49  ;;  %v3825_v18 = vpack.c.bf16 %v473_v17, %v470_v16  ;;  %v469_v19 = vld [vmem:[%s4464_s5 + $0x120] sm:$0xff]  ;;  %v476_v22 = vld [vmem:[%s4464_s5 + $0x158] sm:$0xff]  ;;  %v475_v25 = vld [vmem:[%s4464_s5 + $0x150] sm:$0xff]  ;;  %v167_v16 = vlaneseq }
  0x1a   :  { %2971 = vmatprep.subr.bf16.mxu0 %v3735_v52  ;;  %v3833_v21 = vpack.c.bf16 %v472_v20, %v469_v19  ;;  %v3843_v24 = vpack.c.bf16 %v479_v23, %v476_v22  ;;  %v478_v26 = vld [vmem:[%s4464_s5 + $0x168] sm:$0xff]  ;;  %v2370_v28 = vld [vmem:[%s4461_s2] ss:$0 sm:$0xff]  ;;  %v152_v30 = vld [vmem:[%s4462_s3 + $0x58] sm:$0xff] }
  0x1b   :  { %v3851_v27 = vpack.c.bf16 %v478_v26, %v475_v25  ;;  %v149_v29 = vld [vmem:[%s4462_s3 + $0x40] sm:$0xff]  ;;  %v155_v35 = vld [vmem:[%s4462_s3 + $0x70] sm:$0xff]  ;;  %v158_v36 = vld [vmem:[%s4462_s3 + $0x88] sm:$0xff]  ;;  %v4003_v17 = vshrl.u32 %v167_v16, 7 }
  0x1c   :  { %v2954_v34 = vpack.c.bf16 %v152_v30, %v149_v29  ;;  %v2958_v38 = vpack.c.bf16 %v158_v36, %v155_v35  ;;  %v161_v39 = vld [vmem:[%s4462_s3 + $0xa0] sm:$0xff]  ;;  %v164_v40 = vld [vmem:[%s4462_s3 + $0xb8] sm:$0xff]  ;;  %v438_v44 = vld [vmem:[%s4464_s5 + $0x28] sm:$0xff] }
  0x1d   :  { %2973 = vmatpush1.bf16.msra.mxu0 %v3743_v55  ;;  %v2962_v41 = vpack.c.bf16 %v164_v40, %v161_v39  ;;  %v441_v47 = vld [vmem:[%s4464_s5 + $0x40] sm:$0xff]  ;;  %v444_v50 = vld [vmem:[%s4464_s5 + $0x58] sm:$0xff]  ;;  %v447_v53 = vld [vmem:[%s4464_s5 + $0x70] sm:$0xff]  ;;  %v169_v20 = vsub.s32 0, %v4003_v17  ;;  %v173_v22 = vsub.s32 1, %v4003_v17 }
  0x1e   :  { %2975 = vmatprep.subr.bf16.mxu0 %v3753_v58  ;;  %v3917_v51 = vpack.c.bf16 %v444_v50, %v441_v47  ;;  %v450_v54 = vld [vmem:[%s4464_s5 + $0x88] sm:$0xff]  ;;  %v453_v57 = vld [vmem:[%s4464_s5 + $0xa0] sm:$0xff]  ;;  %v456_v59 = vld [vmem:[%s4464_s5 + $0xb8] sm:$0xff]  ;;  %v3551_v50 = vmov 1983009808  }
  0x1f   :  { %v3929_v56 = vpack.c.bf16 %v450_v54, %v447_v53  ;;  %v3939_v60 = vpack.c.bf16 %v456_v59, %v453_v57  ;;  %v459_v62 = vld [vmem:[%s4464_s5 + $0xd0] sm:$0xff]  ;;  %v462_v63 = vld [vmem:[%s4464_s5 + $0xe8] sm:$0xff]  ;;  %v465_v2 = vld [vmem:[%s4464_s5 + $0x100] sm:$0xff]  ;;  %v351_v53 = vunpack.c.l.s4 %v3551_v50  ;;  %v177_v59 = vsub.s32 2, %v4003_v17 }
  0x20   :  { %v3949_v1 = vpack.c.bf16 %v462_v63, %v459_v62  ;;  %v468_v4 = vld [vmem:[%s4464_s5 + $0x118] sm:$0xff]  ;;  %v471_v7 = vld [vmem:[%s4464_s5 + $0x130] sm:$0xff]  ;;  %v474_v8 = vld [vmem:[%s4464_s5 + $0x148] sm:$0xff] }
  0x21   :  { %2977 = vmatpush1.bf16.msra.mxu0 %v3761_v61  ;;  %v3959_v5 = vpack.c.bf16 %v468_v4, %v465_v2  ;;  %v3969_v10 = vpack.c.bf16 %v474_v8, %v471_v7  ;;  %v477_v11 = vld [vmem:[%s4464_s5 + $0x160] sm:$0xff]  ;;  %v480_v13 = vld [vmem:[%s4464_s5 + $0x178] sm:$0xff]  ;;  %v352_v62 = vunpack.c.0.s8 %v351_v53 }
  0x22   :  { %2979 = vmatprep.subr.bf16.mxu0 %v3771_v0  ;;  %v3979_v14 = vpack.c.bf16 %v480_v13, %v477_v11  ;;  %v481_v19 = vld [vmem:[%s4465_s6] sm:$0x7] }
  0x23   :  { %v4010_v23 = vrot.slane %v481_v19, %v169_v20  ;;  %v4012_v25 = vrot.slane %v481_v19, %v173_v22  ;;  %v4021_v2 = vsub.s32 %v352_v62, %v4003_v17 }
  0x25   :  { %2981 = vmatpush1.bf16.msra.mxu0 %v3779_v3 }
  0x26   :  { %2983 = vmatprep.subr.bf16.mxu0 %v3789_v6 }
  0x29   :  { %2985 = vmatpush1.bf16.msra.mxu0 %v3797_v9 }
  0x2a   :  { %2987 = vmatprep.subr.bf16.mxu0 %v3807_v12 }
  0x2d   :  { %2989 = vmatpush1.bf16.msra.mxu0 %v3815_v15 }
  0x2e   :  { %2991 = vmatprep.subr.bf16.mxu0 %v3825_v18 }
  0x31   :  { %2993 = vmatpush1.bf16.msra.mxu0 %v3833_v21 }
  0x32   :  { %2995 = vmatprep.subr.bf16.mxu0 %v3843_v24 }
  0x35   :  { %2997 = vmatpush1.bf16.msra.mxu0 %v3851_v27 }
  0x36   :  { %3023 = vmatprep.subr.bf16.mxu0 %v3723_v48 }
  0x38   :  { %563 = vmatmul.mubr.f32.vlgmr.msra.gmra.mrb[2].mxu0 %v3548_v43 }
  0x39   :  { %3025 = vmatpush1.bf16.msra.mxu0 %v3725_v49  ;;  %745 = vmatprep.mubr.f32.mxu0 %v3548_v43 }
  0x3a   :  { %3027 = vmatprep.subr.bf16.mxu0 %v3735_v52 }
  0x3d   :  { %3029 = vmatpush1.bf16.msra.mxu0 %v3743_v55 }
  0x3e   :  { %3031 = vmatprep.subr.bf16.mxu0 %v3753_v58 }
  0x41   :  { %3033 = vmatpush1.bf16.msra.mxu0 %v3761_v61 }
  0x42   :  { %3035 = vmatprep.subr.bf16.mxu0 %v3771_v0 }
  0x45   :  { %3037 = vmatpush1.bf16.msra.mxu0 %v3779_v3 }
  0x46   :  { %3039 = vmatprep.subr.bf16.mxu0 %v3789_v6 }
  0x49   :  { %3041 = vmatpush1.bf16.msra.mxu0 %v3797_v9 }
  0x4a   :  { %3043 = vmatprep.subr.bf16.mxu0 %v3807_v12 }
  0x4d   :  { %3045 = vmatpush1.bf16.msra.mxu0 %v3815_v15 }
  0x4e   :  { %3047 = vmatprep.subr.bf16.mxu0 %v3825_v18 }
  0x51   :  { %3049 = vmatpush1.bf16.msra.mxu0 %v3833_v21 }
  0x52   :  { %3051 = vmatprep.subr.bf16.mxu0 %v3843_v24 }
  0x55   :  { %3053 = vmatpush1.bf16.msra.mxu0 %v3851_v27 }
  0x56   :  { %3079 = vmatprep.subr.bf16.mxu0 %v3723_v48 }
  0xeb   :  { %v2583_v31 = vpop.f32.mrb[0].mxu0 }
  0xec   :  { %v132_v32 = vpop.f32.mrb[1].mxu0  ;;  %v138_v37 = vadd.f32 %v2583_v31, %v2370_v28 }
  0xed   :  { %v133_v33 = vadd.f32 %v2370_v28, %v132_v32  ;;  %v165_v32 = vld [vmem:[%s4463_s4] sm:$0x7] }
  0xee   :  { %v178_v63 = vrot.slane %v165_v32, %v177_v59 }
  0xef   :  { %2373 = vmatmul.mubr.msk.f32.vlgmr.msra.gmra.mrb[0].mxu1 %vm182_vm1, %v133_v33 }
  0xf0   :  { %2953 = vmatpush3.bf16.msra.mxu1 %v3706_v42  ;;  %259 = vmatprep.mubr.f32.mxu1 %v3548_v43  ;;  %v435_v42 = vld [vmem:[%s4464_s5 + $0x10] sm:$0xff] }
  0xf1   :  { %2955 = vmatprep.subr.bf16.mxu1 %v2954_v34  ;;  %v3906_v45 = vpack.c.bf16 %v438_v44, %v435_v42 }
  0xf3   :  { %2374 = vmatmul.mubr.msk.f32.gmra.mrb[2].mxu1 %vm182_vm1, %v138_v37 }
  0xf4   :  { %2957 = vmatpush3.bf16.msra.mxu1 %v2954_v34  ;;  %2600 = vmatprep.mubr.msk.f32.mxu1 %vm182_vm1, %v133_v33  ;;  %v170_v33 = vrot.slane %v165_v32, %v169_v20  ;;  %v174_v34 = vrot.slane %v165_v32, %v173_v22 }
  0xf5   :  { %2959 = vmatprep.subr.bf16.mxu1 %v2958_v38 }
  0xf8   :  { %2961 = vmatpush3.bf16.msra.mxu1 %v2958_v38 }
  0xf9   :  { %2963 = vmatprep.subr.bf16.mxu1 %v2962_v41 }
  0xfc   :  { %2965 = vmatpush3.bf16.msra.mxu1 %v2962_v41 }
  0xfd   :  { %2998 = vmatprep.subr.bf16.mxu1 %v3549_v46 }
  0xff   :  { %2601 = vmatmul.mubr.msk.f32.vlgmr.msra.gmra.mrb[4].mxu1 %vm182_vm1, %v138_v37 }
 0x100   :  { %3000 = vmatpush3.bf16.msra.mxu1 %v3906_v45  ;;  %2635 = vmatprep.mubr.msk.f32.mxu1 %vm3550_vm2, %v3548_v43 }
 0x101   :  { %3001 = vmatprep.subr.bf16.mxu1 %v3549_v46 }
 0x104   :  { %3003 = vmatpush3.bf16.msra.mxu1 %v3917_v51 }
 0x105   :  { %3004 = vmatprep.subr.bf16.mxu1 %v3549_v46 }
 0x108   :  { %3006 = vmatpush3.bf16.msra.mxu1 %v3929_v56 }
 0x109   :  { %3007 = vmatprep.subr.bf16.mxu1 %v3549_v46 }
 0x10b   :  { %v564_v26 = vpop.f32.mrb[2].mxu0 }
 0x10c   :  { %3009 = vmatpush3.bf16.msra.mxu1 %v3939_v60  ;;  %v565_v28 = vadd.f32 %v564_v26, %v4010_v23  ;;  %v566_v29 = vpop.f32.mrb[3].mxu0 }
 0x10d   :  { %3010 = vmatprep.subr.bf16.mxu1 %v3549_v46  ;;  %v567_v30 = vadd.f32 %v566_v29, %v4012_v25 }
 0x10f   :  { %v643_v31 = vcombine.low %v565_v28, %v567_v30 }
 0x110   :  { %3012 = vmatpush3.bf16.msra.mxu1 %v3949_v1 }
 0x111   :  { %3013 = vmatprep.subr.bf16.mxu1 %v3549_v46 }
 0x114   :  { %3015 = vmatpush3.bf16.msra.mxu1 %v3959_v5 }
 0x115   :  { %3016 = vmatprep.subr.bf16.mxu1 %v3549_v46 }
 0x118   :  { %3018 = vmatpush3.bf16.msra.mxu1 %v3969_v10 }
 0x119   :  { %3019 = vmatprep.subr.bf16.mxu1 %v3549_v46 }
 0x11c   :  { %3021 = vmatpush3.bf16.msra.mxu1 %v3979_v14 }
 0x11d   :  { %3054 = vmatprep.subr.bf16.mxu1 %v3549_v46 }
 0x11f   :  { %2636 = vmatmul.mubr.f32.vlgmr.msra.gmra.mrb[6].mxu1 %v3548_v43 }
 0x120   :  { %3056 = vmatpush3.bf16.msra.mxu1 %v3906_v45  ;;  %2670 = vmatprep.mubr.msk.f32.mxu1 %vm3550_vm2, %v3548_v43 }
 0x121   :  { %3057 = vmatprep.subr.bf16.mxu1 %v3549_v46 }
 0x124   :  { %3059 = vmatpush3.bf16.msra.mxu1 %v3917_v51 }
 0x125   :  { %3060 = vmatprep.subr.bf16.mxu1 %v3549_v46 }
 0x128   :  { %3062 = vmatpush3.bf16.msra.mxu1 %v3929_v56 }
 0x129   :  { %3063 = vmatprep.subr.bf16.mxu1 %v3549_v46 }
 0x12c   :  { %3065 = vmatpush3.bf16.msra.mxu1 %v3939_v60 }
 0x12d   :  { %3066 = vmatprep.subr.bf16.mxu1 %v3549_v46 }
 0x130   :  { %3068 = vmatpush3.bf16.msra.mxu1 %v3949_v1 }
 0x131   :  { %3069 = vmatprep.subr.bf16.mxu1 %v3549_v46 }
 0x134   :  { %3071 = vmatpush3.bf16.msra.mxu1 %v3959_v5 }
 0x135   :  { %3072 = vmatprep.subr.bf16.mxu1 %v3549_v46 }
 0x138   :  { %3074 = vmatpush3.bf16.msra.mxu1 %v3969_v10 }
 0x139   :  { %3075 = vmatprep.subr.bf16.mxu1 %v3549_v46 }
 0x13c   :  { %3077 = vmatpush3.bf16.msra.mxu1 %v3979_v14 }
 0x13d   :  { %3110 = vmatprep.subr.bf16.mxu1 %v3549_v46 }
 0x1c2   :  { %v255_v35 = vpop.f32.mrb[0].mxu1 }
 0x1c3   :  { %v256_v36 = vadd.f32 %v255_v35, %v170_v33  ;;  %v257_v37 = vpop.f32.mrb[1].mxu1 }
 0x1c4   :  { %v258_v38 = vadd.f32 %v257_v37, %v174_v34 }
 0x1c6   :  { %v347_v39 = vcombine.low %v256_v36, %v258_v38  ;;  %v348_v40 = vcombine.high %v256_v36, %v258_v38  ;;  %v261_v41 = vpop.f32.mrb[2].mxu1 }
 0x1c7   :  { %v262_v42 = vadd.f32 %v261_v41, %v170_v33  ;;  %v263_v44 = vpop.f32.mrb[3].mxu1 }
 0x1c8   :  { %v264_v47 = vadd.f32 %v263_v44, %v174_v34  ;;  %v356_v22 = vrot.slane %v347_v39, %v4021_v2  ;;  %v363_v33 = vrot.slane %v348_v40, %v4021_v2  ;;  %v650_v40 = vrot.slane %v643_v31, %v4021_v2 }
 0x1ca   :  { %v382_v54 = vcombine.low %v262_v42, %v264_v47  ;;  %v383_v57 = vcombine.high %v262_v42, %v264_v47  ;;  %v4031_v42 = vrot.slane %v481_v19, %v177_v59 }
 0x1cc   :  { %v391_v13 = vrot.slane %v382_v54, %v4021_v2  ;;  %v398_v29 = vrot.slane %v383_v57, %v4021_v2 }
 0x1d2   :  { %v2602_v4 = vpop.f32.mrb[4].mxu1 }
 0x1d3   :  { %v338_v7 = vadd.f32 %v2602_v4, %v178_v63  ;;  %v332_v8 = vpop.f32.mrb[5].mxu1 }
 0x1d4   :  { %v333_v11 = vadd.f32 %v332_v8, %v178_v63 }
 0x1d5   :  { %v384_v16 = vcombine.high %v338_v7, %v338_v7  ;;  %v405_v20 = vrot.slane %v338_v7, %v4021_v2 }
 0x1d6   :  { %v349_v26 = vcombine.high %v333_v11, %v333_v11  ;;  %v370_v28 = vrot.slane %v333_v11, %v4021_v2 }
 0x1d7   :  { %v412_v30 = vrot.slane %v384_v16, %v4021_v2  ;;  %v413_v17 = vcombine.low %v391_v13, %v405_v20  ;;  %v414_v32 = vcombine.high %v391_v13, %v405_v20 }
 0x1d8   :  { %v377_v34 = vrot.slane %v349_v26, %v4021_v2  ;;  %v378_v35 = vcombine.low %v356_v22, %v370_v28  ;;  %v379_v36 = vcombine.high %v356_v22, %v370_v28 }
 0x1d9   :  { %v415_v37 = vcombine.low %v398_v29, %v412_v30  ;;  %v416_v38 = vcombine.high %v398_v29, %v412_v30  ;;  %429 = vst [vmem:[#allocation2 + $0x18] sm:$0x3f] %v413_v17  ;;  %430 = vst [vmem:[#allocation2 + $0x1e] sm:$0x3f] %v414_v32 }
 0x1da   :  { %v380_v39 = vcombine.low %v363_v33, %v377_v34  ;;  %v381_v41 = vcombine.high %v363_v33, %v377_v34  ;;  %425 = vst [vmem:[#allocation2] sm:$0x3f] %v378_v35  ;;  %426 = vst [vmem:[#allocation2 + $0x6] sm:$0x3f] %v379_v36 }
 0x1db   :  { %431 = vst [vmem:[#allocation2 + $0x24] sm:$0x3f] %v415_v37  ;;  %432 = vst [vmem:[#allocation2 + $0x2a] sm:$0x3f] %v416_v38 }
 0x1dc   :  { %427 = vst [vmem:[#allocation2 + $0xc] sm:$0x3f] %v380_v39  ;;  %428 = vst [vmem:[#allocation2 + $0x12] sm:$0x3f] %v381_v41 }
 0x1e1   :  { %v639_v57 = vld [vmem:[#allocation2] sm:$0x3f]  ;;  %v823_v39 = vld [vmem:[#allocation2 + $0x6] sm:$0x3f] }
 0x1e2   :  { %v669_v19 = vrot.slane %v639_v57, 4 }
 0x1f2   :  { %v635_v44 = vpop.f32.mrb[6].mxu1 }
 0x1f3   :  { %v636_v47 = vadd.f32 %v635_v44, %v4031_v42  ;;  %v2637_v50 = vpop.f32.mrb[7].mxu1 }
 0x1f5   :  { %v657_v53 = vrot.slane %v636_v47, %v4021_v2 }
 0x1f7   :  { %v658_v54 = vcombine.low %v650_v40, %v657_v53 }
 0x1f9   :  { %v660_v62 = vadd.f32 %v658_v54, %v639_v57  ;;  %v853_v54 = vrot.slane %v823_v39, 4 }
 0x1fb   :  { %v2377_v63 = vmul.f32 -1.442695, %v660_v62 }
 0x1fd   :  { %3454 = vpow2.f32 %v2377_v63 }
 0x207   :  { %v3455_v4 = vpop.eup %3454 }
 0x208   :  { %v664_v7 = vadd.f32 1.0, %v3455_v4 }
 0x20a   :  { %3456 = vrcp.f32 %v664_v7 }
 0x214   :  { %v3457_v8 = vpop.eup %3456 }
 0x215   :  { %v667_v11 = vmul.f32 %v3457_v8, %v636_v47  ;;  %v674_v13 = vrot.slane %v3457_v8, 2 }
 0x217   :  { %v671_v59 = vadd.f32 %v669_v19, %v667_v11  ;;  %v676_v31 = vsub.f32 1.0, %v674_v13  ;;  %v678_v22 = vmul.f32 0.0, %v674_v13 }
 0x219   :  { %3458 = vtanh.f32 %v671_v59 }
 0x223   :  { %v3459_v16 = vpop.eup %3458 }
 0x224   :  { %v677_v20 = vmul.f32 %v3459_v16, %v676_v31 }
 0x226   :  { %v4036_v26 = vadd.f32 %v678_v22, %v677_v20 }
 0x228   :  { %680 = vst [vmem:[#allocation3] sm:$0x3] %v4036_v26  ;;  %746 = vmatmul.mubr.f32.vlgmr.msra.gmra.mrb[4].mxu0 %v4036_v26  ;;  %2671 = vmatmul.mubr.f32.vlgmr.msra.gmra.mrb[8].mxu1 %v4036_v26 }
 0x229   :  { %3081 = vmatpush1.bf16.msra.mxu0 %v3725_v49  ;;  %3112 = vmatpush3.bf16.msra.mxu1 %v3906_v45 }
 0x22a   :  { %3083 = vmatprep.subr.bf16.mxu0 %v3735_v52  ;;  %3113 = vmatprep.subr.bf16.mxu1 %v3549_v46 }
 0x22b   :  { %930 = vmatprep.mubr.f32.mxu0 %v3548_v43  ;;  %2705 = vmatprep.mubr.msk.f32.mxu1 %vm3550_vm2, %v3548_v43 }
 0x22d   :  { %3085 = vmatpush1.bf16.msra.mxu0 %v3743_v55  ;;  %3115 = vmatpush3.bf16.msra.mxu1 %v3917_v51 }
 0x22e   :  { %3087 = vmatprep.subr.bf16.mxu0 %v3753_v58  ;;  %3116 = vmatprep.subr.bf16.mxu1 %v3549_v46 }
 0x231   :  { %3089 = vmatpush1.bf16.msra.mxu0 %v3761_v61  ;;  %3118 = vmatpush3.bf16.msra.mxu1 %v3929_v56 }
 0x232   :  { %3091 = vmatprep.subr.bf16.mxu0 %v3771_v0  ;;  %3119 = vmatprep.subr.bf16.mxu1 %v3549_v46 }
 0x235   :  { %3093 = vmatpush1.bf16.msra.mxu0 %v3779_v3  ;;  %3121 = vmatpush3.bf16.msra.mxu1 %v3939_v60 }
 0x236   :  { %3095 = vmatprep.subr.bf16.mxu0 %v3789_v6  ;;  %3122 = vmatprep.subr.bf16.mxu1 %v3549_v46 }
 0x239   :  { %3097 = vmatpush1.bf16.msra.mxu0 %v3797_v9  ;;  %3124 = vmatpush3.bf16.msra.mxu1 %v3949_v1 }
 0x23a   :  { %3099 = vmatprep.subr.bf16.mxu0 %v3807_v12  ;;  %3125 = vmatprep.subr.bf16.mxu1 %v3549_v46 }
 0x23d   :  { %3101 = vmatpush1.bf16.msra.mxu0 %v3815_v15  ;;  %3127 = vmatpush3.bf16.msra.mxu1 %v3959_v5 }
 0x23e   :  { %3103 = vmatprep.subr.bf16.mxu0 %v3825_v18  ;;  %3128 = vmatprep.subr.bf16.mxu1 %v3549_v46 }
 0x241   :  { %3105 = vmatpush1.bf16.msra.mxu0 %v3833_v21  ;;  %3130 = vmatpush3.bf16.msra.mxu1 %v3969_v10 }
 0x242   :  { %3107 = vmatprep.subr.bf16.mxu0 %v3843_v24  ;;  %3131 = vmatprep.subr.bf16.mxu1 %v3549_v46 }
 0x245   :  { %3109 = vmatpush1.bf16.msra.mxu0 %v3851_v27  ;;  %3133 = vmatpush3.bf16.msra.mxu1 %v3979_v14 }
 0x246   :  { %3135 = vmatprep.subr.bf16.mxu0 %v3723_v48  ;;  %3166 = vmatprep.subr.bf16.mxu1 %v3549_v46 }
 0x2fb   :  { %v747_v28 = vpop.f32.mrb[4].mxu0  ;;  %v818_v29 = vpop.f32.mrb[8].mxu1 }
 0x2fc   :  { %v748_v30 = vadd.f32 %v747_v28, %v4010_v23  ;;  %v749_v17 = vpop.f32.mrb[5].mxu0  ;;  %v2672_v32 = vpop.f32.mrb[9].mxu1  ;;  %v819_v33 = vadd.f32 %v818_v29, %v4031_v42 }
 0x2fd   :  { %v750_v34 = vadd.f32 %v749_v17, %v4012_v25  ;;  %v1008_v17 = vld [vmem:[#allocation2 + $0xc] sm:$0x3f] }
 0x2fe   :  { %v841_v36 = vrot.slane %v819_v33, %v4021_v2 }
 0x2ff   :  { %v827_v35 = vcombine.low %v748_v30, %v750_v34 }
 0x301   :  { %v834_v37 = vrot.slane %v827_v35, %v4021_v2 }
 0x303   :  { %v842_v38 = vcombine.low %v834_v37, %v841_v36 }
 0x305   :  { %v844_v41 = vadd.f32 %v842_v38, %v823_v39  ;;  %v1038_v38 = vrot.slane %v1008_v17, 4 }
 0x307   :  { %v2378_v44 = vmul.f32 -1.442695, %v844_v41 }
 0x309   :  { %3460 = vpow2.f32 %v2378_v44 }
 0x313   :  { %v3461_v40 = vpop.eup %3460 }
 0x314   :  { %v848_v47 = vadd.f32 1.0, %v3461_v40 }
 0x316   :  { %3462 = vrcp.f32 %v848_v47 }
 0x320   :  { %v3463_v50 = vpop.eup %3462 }
 0x321   :  { %v851_v53 = vmul.f32 %v3463_v50, %v819_v33  ;;  %v858_v62 = vrot.slane %v3463_v50, 2 }
 0x323   :  { %v855_v57 = vadd.f32 %v853_v54, %v851_v53  ;;  %v860_v63 = vsub.f32 1.0, %v858_v62  ;;  %v862_v8 = vmul.f32 %v858_v62, %v4036_v26 }
 0x325   :  { %3464 = vtanh.f32 %v855_v57 }
 0x32f   :  { %v3465_v4 = vpop.eup %3464 }
 0x330   :  { %v861_v7 = vmul.f32 %v3465_v4, %v860_v63 }
 0x332   :  { %v4082_v11 = vadd.f32 %v862_v8, %v861_v7 }
 0x334   :  { %865 = vst [vmem:[#allocation3 + $0x2] sm:$0x3] %v4082_v11  ;;  %931 = vmatmul.mubr.f32.vlgmr.msra.gmra.mrb[6].mxu0 %v4082_v11  ;;  %2706 = vmatmul.mubr.f32.vlgmr.msra.gmra.mrb[10].mxu1 %v4082_v11 }
 0x335   :  { %3137 = vmatpush1.bf16.msra.mxu0 %v3725_v49  ;;  %3168 = vmatpush3.bf16.msra.mxu1 %v3906_v45 }
 0x336   :  { %3139 = vmatprep.subr.bf16.mxu0 %v3735_v52  ;;  %3169 = vmatprep.subr.bf16.mxu1 %v3549_v46 }
 0x337   :  { %1115 = vmatprep.mubr.f32.mxu0 %v3548_v43  ;;  %2740 = vmatprep.mubr.msk.f32.mxu1 %vm3550_vm2, %v3548_v43 }
 0x339   :  { %3141 = vmatpush1.bf16.msra.mxu0 %v3743_v55  ;;  %3171 = vmatpush3.bf16.msra.mxu1 %v3917_v51 }
 0x33a   :  { %3143 = vmatprep.subr.bf16.mxu0 %v3753_v58  ;;  %3172 = vmatprep.subr.bf16.mxu1 %v3549_v46 }
 0x33d   :  { %3145 = vmatpush1.bf16.msra.mxu0 %v3761_v61  ;;  %3174 = vmatpush3.bf16.msra.mxu1 %v3929_v56 }
 0x33e   :  { %3147 = vmatprep.subr.bf16.mxu0 %v3771_v0  ;;  %3175 = vmatprep.subr.bf16.mxu1 %v3549_v46 }
 0x341   :  { %3149 = vmatpush1.bf16.msra.mxu0 %v3779_v3  ;;  %3177 = vmatpush3.bf16.msra.mxu1 %v3939_v60 }
 0x342   :  { %3151 = vmatprep.subr.bf16.mxu0 %v3789_v6  ;;  %3178 = vmatprep.subr.bf16.mxu1 %v3549_v46 }
 0x345   :  { %3153 = vmatpush1.bf16.msra.mxu0 %v3797_v9  ;;  %3180 = vmatpush3.bf16.msra.mxu1 %v3949_v1 }
 0x346   :  { %3155 = vmatprep.subr.bf16.mxu0 %v3807_v12  ;;  %3181 = vmatprep.subr.bf16.mxu1 %v3549_v46 }
 0x349   :  { %3157 = vmatpush1.bf16.msra.mxu0 %v3815_v15  ;;  %3183 = vmatpush3.bf16.msra.mxu1 %v3959_v5 }
 0x34a   :  { %3159 = vmatprep.subr.bf16.mxu0 %v3825_v18  ;;  %3184 = vmatprep.subr.bf16.mxu1 %v3549_v46 }
 0x34d   :  { %3161 = vmatpush1.bf16.msra.mxu0 %v3833_v21  ;;  %3186 = vmatpush3.bf16.msra.mxu1 %v3969_v10 }
 0x34e   :  { %3163 = vmatprep.subr.bf16.mxu0 %v3843_v24  ;;  %3187 = vmatprep.subr.bf16.mxu1 %v3549_v46 }
 0x351   :  { %3165 = vmatpush1.bf16.msra.mxu0 %v3851_v27  ;;  %3189 = vmatpush3.bf16.msra.mxu1 %v3979_v14 }
 0x352   :  { %3191 = vmatprep.subr.bf16.mxu0 %v3723_v48  ;;  %3222 = vmatprep.subr.bf16.mxu1 %v3549_v46 }
 0x407   :  { %v932_v19 = vpop.f32.mrb[6].mxu0  ;;  %v1003_v59 = vpop.f32.mrb[10].mxu1 }
 0x408   :  { %v933_v13 = vadd.f32 %v932_v19, %v4010_v23  ;;  %v934_v31 = vpop.f32.mrb[7].mxu0  ;;  %v2707_v16 = vpop.f32.mrb[11].mxu1  ;;  %v1004_v20 = vadd.f32 %v1003_v59, %v4031_v42 }
 0x409   :  { %v935_v22 = vadd.f32 %v934_v31, %v4012_v25  ;;  %v1193_v31 = vld [vmem:[#allocation2 + $0x12] sm:$0x3f] }
 0x40a   :  { %v1026_v28 = vrot.slane %v1004_v20, %v4021_v2 }
 0x40b   :  { %v1012_v26 = vcombine.low %v933_v13, %v935_v22 }
 0x40d   :  { %v1019_v29 = vrot.slane %v1012_v26, %v4021_v2 }
 0x40f   :  { %v1027_v30 = vcombine.low %v1019_v29, %v1026_v28 }
 0x411   :  { %v1029_v32 = vadd.f32 %v1027_v30, %v1008_v17  ;;  %v1223_v30 = vrot.slane %v1193_v31, 4 }
 0x413   :  { %v2379_v33 = vmul.f32 -1.442695, %v1029_v32 }
 0x415   :  { %3466 = vpow2.f32 %v2379_v33 }
 0x41f   :  { %v3467_v34 = vpop.eup %3466 }
 0x420   :  { %v1033_v35 = vadd.f32 1.0, %v3467_v34 }
 0x422   :  { %3468 = vrcp.f32 %v1033_v35 }
 0x42c   :  { %v3469_v36 = vpop.eup %3468 }
 0x42d   :  { %v1036_v37 = vmul.f32 %v3469_v36, %v1004_v20  ;;  %v1043_v41 = vrot.slane %v3469_v36, 2 }
 0x42f   :  { %v1040_v39 = vadd.f32 %v1038_v38, %v1036_v37  ;;  %v1045_v44 = vsub.f32 1.0, %v1043_v41  ;;  %v1047_v50 = vmul.f32 %v1043_v41, %v4082_v11 }
 0x431   :  { %3470 = vtanh.f32 %v1040_v39 }
 0x43b   :  { %v3471_v40 = vpop.eup %3470 }
 0x43c   :  { %v1046_v47 = vmul.f32 %v3471_v40, %v1045_v44 }
 0x43e   :  { %v4128_v53 = vadd.f32 %v1047_v50, %v1046_v47 }
 0x440   :  { %1050 = vst [vmem:[#allocation3 + $0x4] sm:$0x3] %v4128_v53  ;;  %1116 = vmatmul.mubr.f32.vlgmr.msra.gmra.mrb[8].mxu0 %v4128_v53  ;;  %2741 = vmatmul.mubr.f32.vlgmr.msra.gmra.mrb[12].mxu1 %v4128_v53 }
 0x441   :  { %3193 = vmatpush1.bf16.msra.mxu0 %v3725_v49  ;;  %3224 = vmatpush3.bf16.msra.mxu1 %v3906_v45 }
 0x442   :  { %3195 = vmatprep.subr.bf16.mxu0 %v3735_v52  ;;  %3225 = vmatprep.subr.bf16.mxu1 %v3549_v46 }
 0x443   :  { %1300 = vmatprep.mubr.f32.mxu0 %v3548_v43  ;;  %2775 = vmatprep.mubr.msk.f32.mxu1 %vm3550_vm2, %v3548_v43 }
 0x445   :  { %3197 = vmatpush1.bf16.msra.mxu0 %v3743_v55  ;;  %3227 = vmatpush3.bf16.msra.mxu1 %v3917_v51 }
 0x446   :  { %3199 = vmatprep.subr.bf16.mxu0 %v3753_v58  ;;  %3228 = vmatprep.subr.bf16.mxu1 %v3549_v46 }
 0x449   :  { %3201 = vmatpush1.bf16.msra.mxu0 %v3761_v61  ;;  %3230 = vmatpush3.bf16.msra.mxu1 %v3929_v56 }
 0x44a   :  { %3203 = vmatprep.subr.bf16.mxu0 %v3771_v0  ;;  %3231 = vmatprep.subr.bf16.mxu1 %v3549_v46 }
 0x44d   :  { %3205 = vmatpush1.bf16.msra.mxu0 %v3779_v3  ;;  %3233 = vmatpush3.bf16.msra.mxu1 %v3939_v60 }
 0x44e   :  { %3207 = vmatprep.subr.bf16.mxu0 %v3789_v6  ;;  %3234 = vmatprep.subr.bf16.mxu1 %v3549_v46 }
 0x451   :  { %3209 = vmatpush1.bf16.msra.mxu0 %v3797_v9  ;;  %3236 = vmatpush3.bf16.msra.mxu1 %v3949_v1 }
 0x452   :  { %3211 = vmatprep.subr.bf16.mxu0 %v3807_v12  ;;  %3237 = vmatprep.subr.bf16.mxu1 %v3549_v46 }
 0x455   :  { %3213 = vmatpush1.bf16.msra.mxu0 %v3815_v15  ;;  %3239 = vmatpush3.bf16.msra.mxu1 %v3959_v5 }
 0x456   :  { %3215 = vmatprep.subr.bf16.mxu0 %v3825_v18  ;;  %3240 = vmatprep.subr.bf16.mxu1 %v3549_v46 }
 0x459   :  { %3217 = vmatpush1.bf16.msra.mxu0 %v3833_v21  ;;  %3242 = vmatpush3.bf16.msra.mxu1 %v3969_v10 }
 0x45a   :  { %3219 = vmatprep.subr.bf16.mxu0 %v3843_v24  ;;  %3243 = vmatprep.subr.bf16.mxu1 %v3549_v46 }
 0x45d   :  { %3221 = vmatpush1.bf16.msra.mxu0 %v3851_v27  ;;  %3245 = vmatpush3.bf16.msra.mxu1 %v3979_v14 }
 0x45e   :  { %3247 = vmatprep.subr.bf16.mxu0 %v3723_v48  ;;  %3278 = vmatprep.subr.bf16.mxu1 %v3549_v46 }
 0x513   :  { %v1117_v54 = vpop.f32.mrb[8].mxu0  ;;  %v1188_v57 = vpop.f32.mrb[12].mxu1 }
 0x514   :  { %v1118_v62 = vadd.f32 %v1117_v54, %v4010_v23  ;;  %v1119_v63 = vpop.f32.mrb[9].mxu0  ;;  %v2742_v4 = vpop.f32.mrb[13].mxu1  ;;  %v1189_v7 = vadd.f32 %v1188_v57, %v4031_v42 }
 0x515   :  { %v1120_v8 = vadd.f32 %v1119_v63, %v4012_v25  ;;  %v1378_v63 = vld [vmem:[#allocation2 + $0x18] sm:$0x3f] }
 0x516   :  { %v1211_v19 = vrot.slane %v1189_v7, %v4021_v2 }
 0x517   :  { %v1197_v11 = vcombine.low %v1118_v62, %v1120_v8 }
 0x519   :  { %v1204_v59 = vrot.slane %v1197_v11, %v4021_v2 }
 0x51b   :  { %v1212_v13 = vcombine.low %v1204_v59, %v1211_v19 }
 0x51d   :  { %v1214_v16 = vadd.f32 %v1212_v13, %v1193_v31  ;;  %v1408_v13 = vrot.slane %v1378_v63, 4 }
 0x51f   :  { %v2380_v20 = vmul.f32 -1.442695, %v1214_v16 }
 0x521   :  { %3472 = vpow2.f32 %v2380_v20 }
 0x52b   :  { %v3473_v22 = vpop.eup %3472 }
 0x52c   :  { %v1218_v26 = vadd.f32 1.0, %v3473_v22 }
 0x52e   :  { %3474 = vrcp.f32 %v1218_v26 }
 0x538   :  { %v3475_v28 = vpop.eup %3474 }
 0x539   :  { %v1221_v29 = vmul.f32 %v3475_v28, %v1189_v7  ;;  %v1228_v32 = vrot.slane %v3475_v28, 2 }
 0x53b   :  { %v1225_v17 = vadd.f32 %v1223_v30, %v1221_v29  ;;  %v1230_v33 = vsub.f32 1.0, %v1228_v32  ;;  %v1232_v36 = vmul.f32 %v1228_v32, %v4128_v53 }
 0x53d   :  { %3476 = vtanh.f32 %v1225_v17 }
 0x547   :  { %v3477_v34 = vpop.eup %3476 }
 0x548   :  { %v1231_v35 = vmul.f32 %v3477_v34, %v1230_v33 }
 0x54a   :  { %v4174_v37 = vadd.f32 %v1232_v36, %v1231_v35 }
 0x54c   :  { %1235 = vst [vmem:[#allocation3 + $0x6] sm:$0x3] %v4174_v37  ;;  %1301 = vmatmul.mubr.f32.vlgmr.msra.gmra.mrb[10].mxu0 %v4174_v37  ;;  %2776 = vmatmul.mubr.f32.vlgmr.msra.gmra.mrb[14].mxu1 %v4174_v37 }
 0x54d   :  { %3249 = vmatpush1.bf16.msra.mxu0 %v3725_v49  ;;  %3280 = vmatpush3.bf16.msra.mxu1 %v3906_v45 }
 0x54e   :  { %3251 = vmatprep.subr.bf16.mxu0 %v3735_v52  ;;  %3281 = vmatprep.subr.bf16.mxu1 %v3549_v46 }
 0x54f   :  { %1485 = vmatprep.mubr.f32.mxu0 %v3548_v43  ;;  %2810 = vmatprep.mubr.msk.f32.mxu1 %vm3550_vm2, %v3548_v43 }
 0x551   :  { %3253 = vmatpush1.bf16.msra.mxu0 %v3743_v55  ;;  %3283 = vmatpush3.bf16.msra.mxu1 %v3917_v51 }
 0x552   :  { %3255 = vmatprep.subr.bf16.mxu0 %v3753_v58  ;;  %3284 = vmatprep.subr.bf16.mxu1 %v3549_v46 }
 0x555   :  { %3257 = vmatpush1.bf16.msra.mxu0 %v3761_v61  ;;  %3286 = vmatpush3.bf16.msra.mxu1 %v3929_v56 }
 0x556   :  { %3259 = vmatprep.subr.bf16.mxu0 %v3771_v0  ;;  %3287 = vmatprep.subr.bf16.mxu1 %v3549_v46 }
 0x559   :  { %3261 = vmatpush1.bf16.msra.mxu0 %v3779_v3  ;;  %3289 = vmatpush3.bf16.msra.mxu1 %v3939_v60 }
 0x55a   :  { %3263 = vmatprep.subr.bf16.mxu0 %v3789_v6  ;;  %3290 = vmatprep.subr.bf16.mxu1 %v3549_v46 }
 0x55d   :  { %3265 = vmatpush1.bf16.msra.mxu0 %v3797_v9  ;;  %3292 = vmatpush3.bf16.msra.mxu1 %v3949_v1 }
 0x55e   :  { %3267 = vmatprep.subr.bf16.mxu0 %v3807_v12  ;;  %3293 = vmatprep.subr.bf16.mxu1 %v3549_v46 }
 0x561   :  { %3269 = vmatpush1.bf16.msra.mxu0 %v3815_v15  ;;  %3295 = vmatpush3.bf16.msra.mxu1 %v3959_v5 }
 0x562   :  { %3271 = vmatprep.subr.bf16.mxu0 %v3825_v18  ;;  %3296 = vmatprep.subr.bf16.mxu1 %v3549_v46 }
 0x565   :  { %3273 = vmatpush1.bf16.msra.mxu0 %v3833_v21  ;;  %3298 = vmatpush3.bf16.msra.mxu1 %v3969_v10 }
 0x566   :  { %3275 = vmatprep.subr.bf16.mxu0 %v3843_v24  ;;  %3299 = vmatprep.subr.bf16.mxu1 %v3549_v46 }
 0x569   :  { %3277 = vmatpush1.bf16.msra.mxu0 %v3851_v27  ;;  %3301 = vmatpush3.bf16.msra.mxu1 %v3979_v14 }
 0x56a   :  { %3303 = vmatprep.subr.bf16.mxu0 %v3723_v48  ;;  %3334 = vmatprep.subr.bf16.mxu1 %v3549_v46 }
 0x61f   :  { %v1302_v38 = vpop.f32.mrb[10].mxu0  ;;  %v1373_v39 = vpop.f32.mrb[14].mxu1 }
 0x620   :  { %v1303_v41 = vadd.f32 %v1302_v38, %v4010_v23  ;;  %v1304_v44 = vpop.f32.mrb[11].mxu0  ;;  %v2777_v40 = vpop.f32.mrb[15].mxu1  ;;  %v1374_v47 = vadd.f32 %v1373_v39, %v4031_v42 }
 0x621   :  { %v1305_v50 = vadd.f32 %v1304_v44, %v4012_v25  ;;  %v1563_v44 = vld [vmem:[#allocation2 + $0x1e] sm:$0x3f] }
 0x622   :  { %v1396_v54 = vrot.slane %v1374_v47, %v4021_v2 }
 0x623   :  { %v1382_v53 = vcombine.low %v1303_v41, %v1305_v50 }
 0x625   :  { %v1389_v57 = vrot.slane %v1382_v53, %v4021_v2 }
 0x627   :  { %v1397_v62 = vcombine.low %v1389_v57, %v1396_v54  ;;  %v1593_v57 = vrot.slane %v1563_v44, 4 }
 0x629   :  { %v1399_v4 = vadd.f32 %v1397_v62, %v1378_v63 }
 0x62b   :  { %v2381_v7 = vmul.f32 -1.442695, %v1399_v4 }
 0x62d   :  { %3478 = vpow2.f32 %v2381_v7 }
 0x637   :  { %v3479_v8 = vpop.eup %3478 }
 0x638   :  { %v1403_v11 = vadd.f32 1.0, %v3479_v8 }
 0x63a   :  { %3480 = vrcp.f32 %v1403_v11 }
 0x644   :  { %v3481_v19 = vpop.eup %3480 }
 0x645   :  { %v1406_v59 = vmul.f32 %v3481_v19, %v1374_v47  ;;  %v1413_v16 = vrot.slane %v3481_v19, 2 }
 0x647   :  { %v1410_v31 = vadd.f32 %v1408_v13, %v1406_v59  ;;  %v1415_v20 = vsub.f32 1.0, %v1413_v16  ;;  %v1417_v28 = vmul.f32 %v1413_v16, %v4174_v37  ;;  %v4317_v59 = vld [vmem:[#allocation3] sm:$0x3] }
 0x649   :  { %3482 = vtanh.f32 %v1410_v31 }
 0x653   :  { %v3483_v22 = vpop.eup %3482 }
 0x654   :  { %v1416_v26 = vmul.f32 %v3483_v22, %v1415_v20 }
 0x656   :  { %v4220_v29 = vadd.f32 %v1417_v28, %v1416_v26 }
 0x658   :  { %1420 = vst [vmem:[#allocation3 + $0x8] sm:$0x3] %v4220_v29  ;;  %1486 = vmatmul.mubr.f32.vlgmr.msra.gmra.mrb[12].mxu0 %v4220_v29  ;;  %2811 = vmatmul.mubr.f32.vlgmr.msra.gmra.mrb[16].mxu1 %v4220_v29 }
 0x659   :  { %3305 = vmatpush1.bf16.msra.mxu0 %v3725_v49  ;;  %3336 = vmatpush3.bf16.msra.mxu1 %v3906_v45 }
 0x65a   :  { %3307 = vmatprep.subr.bf16.mxu0 %v3735_v52  ;;  %3337 = vmatprep.subr.bf16.mxu1 %v3549_v46 }
 0x65b   :  { %1670 = vmatprep.mubr.f32.mxu0 %v3548_v43  ;;  %2845 = vmatprep.mubr.msk.f32.mxu1 %vm3550_vm2, %v3548_v43 }
 0x65d   :  { %3309 = vmatpush1.bf16.msra.mxu0 %v3743_v55  ;;  %3339 = vmatpush3.bf16.msra.mxu1 %v3917_v51 }
 0x65e   :  { %3311 = vmatprep.subr.bf16.mxu0 %v3753_v58  ;;  %3340 = vmatprep.subr.bf16.mxu1 %v3549_v46 }
 0x661   :  { %3313 = vmatpush1.bf16.msra.mxu0 %v3761_v61  ;;  %3342 = vmatpush3.bf16.msra.mxu1 %v3929_v56 }
 0x662   :  { %3315 = vmatprep.subr.bf16.mxu0 %v3771_v0  ;;  %3343 = vmatprep.subr.bf16.mxu1 %v3549_v46 }
 0x665   :  { %3317 = vmatpush1.bf16.msra.mxu0 %v3779_v3  ;;  %3345 = vmatpush3.bf16.msra.mxu1 %v3939_v60 }
 0x666   :  { %3319 = vmatprep.subr.bf16.mxu0 %v3789_v6  ;;  %3346 = vmatprep.subr.bf16.mxu1 %v3549_v46 }
 0x669   :  { %3321 = vmatpush1.bf16.msra.mxu0 %v3797_v9  ;;  %3348 = vmatpush3.bf16.msra.mxu1 %v3949_v1 }
 0x66a   :  { %3323 = vmatprep.subr.bf16.mxu0 %v3807_v12  ;;  %3349 = vmatprep.subr.bf16.mxu1 %v3549_v46 }
 0x66d   :  { %3325 = vmatpush1.bf16.msra.mxu0 %v3815_v15  ;;  %3351 = vmatpush3.bf16.msra.mxu1 %v3959_v5 }
 0x66e   :  { %3327 = vmatprep.subr.bf16.mxu0 %v3825_v18  ;;  %3352 = vmatprep.subr.bf16.mxu1 %v3549_v46 }
 0x671   :  { %3329 = vmatpush1.bf16.msra.mxu0 %v3833_v21  ;;  %3354 = vmatpush3.bf16.msra.mxu1 %v3969_v10 }
 0x672   :  { %3331 = vmatprep.subr.bf16.mxu0 %v3843_v24  ;;  %3355 = vmatprep.subr.bf16.mxu1 %v3549_v46 }
 0x675   :  { %3333 = vmatpush1.bf16.msra.mxu0 %v3851_v27  ;;  %3357 = vmatpush3.bf16.msra.mxu1 %v3979_v14 }
 0x676   :  { %3359 = vmatprep.subr.bf16.mxu0 %v3723_v48  ;;  %3390 = vmatprep.subr.bf16.mxu1 %v3549_v46 }
 0x72b   :  { %v1487_v30 = vpop.f32.mrb[12].mxu0  ;;  %v1558_v17 = vpop.f32.mrb[16].mxu1 }
 0x72c   :  { %v1488_v32 = vadd.f32 %v1487_v30, %v4010_v23  ;;  %v1489_v33 = vpop.f32.mrb[13].mxu0  ;;  %v2812_v34 = vpop.f32.mrb[17].mxu1  ;;  %v1559_v35 = vadd.f32 %v1558_v17, %v4031_v42  ;;  %v1984_v17 = vld [vmem:[%s4466_s7] sm:$0xff] }
 0x72d   :  { %v1490_v36 = vadd.f32 %v1489_v33, %v4012_v25  ;;  %v1986_v34 = vld [vmem:[%s4466_s7 + $0x10] sm:$0xff] }
 0x72e   :  { %v1581_v38 = vrot.slane %v1559_v35, %v4021_v2 }
 0x72f   :  { %v1567_v37 = vcombine.low %v1488_v32, %v1490_v36  ;;  %v1985_v32 = vld [vmem:[%s4466_s7 + $0x8] sm:$0xff] }
 0x730   :  { %v3414_v33 = vpack.c.bf16 %v1985_v32, %v1984_v17  ;;  %v2385_v17 = vld [vmem:[%s4467_s8] ss:$0 sm:$0xff]  ;;  %s3553_s8 = smov [#allocation5]  }
 0x731   :  { %v1574_v39 = vrot.slane %v1567_v37, %v4021_v2  ;;  %v1988_v37 = vld [vmem:[%s4466_s7 + $0x20] sm:$0xff] }
 0x733   :  { %v1582_v41 = vcombine.low %v1574_v39, %v1581_v38  ;;  %v1989_v38 = vld [vmem:[%s4466_s7 + $0x28] sm:$0xff] }
 0x734   :  { %v3422_v39 = vpack.c.bf16 %v1989_v38, %v1988_v37  ;;  %v2386_v37 = vld [vmem:[%s4468_s9] ss:$0 sm:$0xff]  ;;  %s2362_s9 = sshll.u32 %s3553_s8, 4  ;;  %s2363_s9 = int_to_ptr.vmem [resolvable:$true] %s2362_s9 }
 0x735   :  { %v1584_v48 = vadd.f32 %v1582_v41, %v1563_v44  ;;  %v1990_v41 = vld [vmem:[%s4466_s7 + $0x30] sm:$0xff]  ;;  %v1991_v44 = vld [vmem:[%s4466_s7 + $0x38] sm:$0xff]  ;;  %s3524_s20 = scalar_lea.vmem %s2363_s9, 32  ;;  %p3529_p1 = scmp.lt.s32.totalorder %s2363_s9, %s2363_s9 }
 0x736   :  { %p3525_p0 = scmp.ne.s32.totalorder %s2363_s9, %s3524_s20  ;;  %p3530_p2 = scmp.lt.s32.totalorder %s3524_s20, %s3524_s20 }
 0x737   :  { %v2382_v40 = vmul.f32 -1.442695, %v1584_v48  ;;  %v3426_v48 = vpack.c.bf16 %v1991_v44, %v1990_v41 }
 0x738   :  { %p3531_p3 = por %p3530_p2, %p3529_p1 }
 0x739   :  { %3484 = vpow2.f32 %v2382_v40  ;;  %v1992_v40 = vld [vmem:[%s4466_s7 + $0x40] sm:$0xff] }
 0x73a   :  { %p3532_p4 = pnand %p3531_p3, %p3525_p0 }
 0x743   :  { %v3485_v47 = vpop.eup %3484 }
 0x744   :  { %v1588_v50 = vadd.f32 1.0, %v3485_v47  ;;  %v1993_v47 = vld [vmem:[%s4466_s7 + $0x48] sm:$0xff] }
 0x746   :  { %3486 = vrcp.f32 %v1588_v50  ;;  %v3430_v50 = vpack.c.bf16 %v1993_v47, %v1992_v40 }
 0x750   :  { %v3487_v53 = vpop.eup %3486 }
 0x751   :  { %v1591_v54 = vmul.f32 %v3487_v53, %v1559_v35  ;;  %v1598_v63 = vrot.slane %v3487_v53, 2  ;;  %v1987_v35 = vld [vmem:[%s4466_s7 + $0x18] sm:$0xff]  ;;  %v1994_v53 = vld [vmem:[%s4466_s7 + $0x50] sm:$0xff] }
 0x752   :  { %v3418_v36 = vpack.c.bf16 %v1987_v35, %v1986_v34 }
 0x753   :  { %v1595_v62 = vadd.f32 %v1593_v57, %v1591_v54  ;;  %v1600_v4 = vsub.f32 1.0, %v1598_v63  ;;  %v1602_v11 = vmul.f32 %v1598_v63, %v4220_v29  ;;  %v1995_v54 = vld [vmem:[%s4466_s7 + $0x58] sm:$0xff]  ;;  %v1997_v63 = vld [vmem:[%s4466_s7 + $0x68] sm:$0xff] }
 0x754   :  { %v3434_v57 = vpack.c.bf16 %v1995_v54, %v1994_v53 }
 0x755   :  { %3488 = vtanh.f32 %v1595_v62  ;;  %v1996_v62 = vld [vmem:[%s4466_s7 + $0x60] sm:$0xff] }
 0x75f   :  { %v3489_v7 = vpop.eup %3488 }
 0x760   :  { %v1601_v8 = vmul.f32 %v3489_v7, %v1600_v4  ;;  %v3438_v4 = vpack.c.bf16 %v1997_v63, %v1996_v62  ;;  %v1998_v7 = vld [vmem:[%s4466_s7 + $0x70] sm:$0xff] }
 0x762   :  { %v4266_v19 = vadd.f32 %v1602_v11, %v1601_v8  ;;  %v1999_v8 = vld [vmem:[%s4466_s7 + $0x78] sm:$0xff] }
 0x763   :  { %v3442_v11 = vpack.c.bf16 %v1999_v8, %v1998_v7 }
 0x764   :  { %1605 = vst [vmem:[#allocation3 + $0xa] sm:$0x3] %v4266_v19  ;;  %1671 = vmatmul.mubr.f32.vlgmr.msra.gmra.mrb[14].mxu0 %v4266_v19  ;;  %2846 = vmatmul.mubr.f32.vlgmr.msra.gmra.mrb[18].mxu1 %v4266_v19 }
 0x765   :  { %3361 = vmatpush1.bf16.msra.mxu0 %v3725_v49  ;;  %3392 = vmatpush3.bf16.msra.mxu1 %v3906_v45 }
 0x766   :  { %3363 = vmatprep.subr.bf16.mxu0 %v3735_v52  ;;  %3393 = vmatprep.subr.bf16.mxu1 %v3549_v46 }
 0x767   :  { %1855 = vmatprep.mubr.f32.mxu0 %v3548_v43  ;;  %2880 = vmatprep.mubr.msk.f32.mxu1 %vm3550_vm2, %v3548_v43 }
 0x769   :  { %3365 = vmatpush1.bf16.msra.mxu0 %v3743_v55  ;;  %3395 = vmatpush3.bf16.msra.mxu1 %v3917_v51 }
 0x76a   :  { %3367 = vmatprep.subr.bf16.mxu0 %v3753_v58  ;;  %3396 = vmatprep.subr.bf16.mxu1 %v3549_v46 }
 0x76d   :  { %3369 = vmatpush1.bf16.msra.mxu0 %v3761_v61  ;;  %3398 = vmatpush3.bf16.msra.mxu1 %v3929_v56 }
 0x76e   :  { %3371 = vmatprep.subr.bf16.mxu0 %v3771_v0  ;;  %3399 = vmatprep.subr.bf16.mxu1 %v3549_v46 }
 0x771   :  { %3373 = vmatpush1.bf16.msra.mxu0 %v3779_v3  ;;  %3401 = vmatpush3.bf16.msra.mxu1 %v3939_v60  ;;  %v4309_v60 = vld [vmem:[#allocation3 + $0x6] sm:$0x3] }
 0x772   :  { %3375 = vmatprep.subr.bf16.mxu0 %v3789_v6  ;;  %3402 = vmatprep.subr.bf16.mxu1 %v3549_v46 }
 0x775   :  { %3377 = vmatpush1.bf16.msra.mxu0 %v3797_v9  ;;  %3404 = vmatpush3.bf16.msra.mxu1 %v3949_v1 }
 0x776   :  { %3379 = vmatprep.subr.bf16.mxu0 %v3807_v12  ;;  %3405 = vmatprep.subr.bf16.mxu1 %v3549_v46 }
 0x779   :  { %3381 = vmatpush1.bf16.msra.mxu0 %v3815_v15  ;;  %3407 = vmatpush3.bf16.msra.mxu1 %v3959_v5  ;;  %v1748_v15 = vld [vmem:[#allocation2 + $0x24] sm:$0x3f]  ;;  %v4311_v5 = vld [vmem:[#allocation3 + $0x2] sm:$0x3] }
 0x77a   :  { %3383 = vmatprep.subr.bf16.mxu0 %v3825_v18  ;;  %3408 = vmatprep.subr.bf16.mxu1 %v3549_v46  ;;  %v1778_v51 = vrot.slane %v1748_v15, 4  ;;  %v2015_v13 = vcombine.low %v4317_v59, %v4311_v5 }
 0x77c   :  { %v2023_v28 = vrot.slane %v2015_v13, %v4021_v2  ;;  %v4383_v13 = vld [vmem:[#allocation3 + $0xa] sm:$0x3] }
 0x77d   :  { %3385 = vmatpush1.bf16.msra.mxu0 %v3833_v21  ;;  %3410 = vmatpush3.bf16.msra.mxu1 %v3969_v10  ;;  %v4313_v10 = vld [vmem:[#allocation3 + $0x4] sm:$0x3] }
 0x77e   :  { %3387 = vmatprep.subr.bf16.mxu0 %v3843_v24  ;;  %3411 = vmatprep.subr.bf16.mxu1 %v3549_v46 }
 0x781   :  { %3389 = vmatpush1.bf16.msra.mxu0 %v3851_v27  ;;  %3413 = vmatpush3.bf16.msra.mxu1 %v3979_v14  ;;  %v2016_v14 = vcombine.low %v4313_v10, %v4309_v60 }
 0x782   :  { %3415 = vmatprep.subr.bf16.mxu0 %v3414_v33 }
 0x783   :  { %v2030_v20 = vrot.slane %v2016_v14, %v4021_v2 }
 0x785   :  { %v2031_v30 = vcombine.low %v2023_v28, %v2030_v20 }
 0x837   :  { %v1672_v43 = vpop.f32.mrb[14].mxu0  ;;  %v1743_v49 = vpop.f32.mrb[18].mxu1 }
 0x838   :  { %v1673_v52 = vadd.f32 %v1672_v43, %v4010_v23  ;;  %v1674_v55 = vpop.f32.mrb[15].mxu0  ;;  %v2847_v58 = vpop.f32.mrb[19].mxu1  ;;  %v1744_v61 = vadd.f32 %v1743_v49, %v4031_v42 }
 0x839   :  { %v1675_v0 = vadd.f32 %v1674_v55, %v4012_v25 }
 0x83a   :  { %v1766_v6 = vrot.slane %v1744_v61, %v4021_v2 }
 0x83b   :  { %v1752_v3 = vcombine.low %v1673_v52, %v1675_v0 }
 0x83d   :  { %v1759_v9 = vrot.slane %v1752_v3, %v4021_v2 }
 0x83f   :  { %v1767_v12 = vcombine.low %v1759_v9, %v1766_v6 }
 0x841   :  { %v1769_v18 = vadd.f32 %v1767_v12, %v1748_v15  ;;  %v1933_v12 = vld [vmem:[#allocation2 + $0x2a] sm:$0x3f] }
 0x843   :  { %v2383_v21 = vmul.f32 -1.442695, %v1769_v18 }
 0x845   :  { %3490 = vpow2.f32 %v2383_v21 }
 0x84f   :  { %v3491_v24 = vpop.eup %3490 }
 0x850   :  { %v1773_v27 = vadd.f32 1.0, %v3491_v24 }
 0x852   :  { %3492 = vrcp.f32 %v1773_v27 }
 0x85c   :  { %v3493_v45 = vpop.eup %3492 }
 0x85d   :  { %v1776_v46 = vmul.f32 %v3493_v45, %v1744_v61  ;;  %v1783_v1 = vrot.slane %v3493_v45, 2  ;;  %v1963_v45 = vrot.slane %v1933_v12, 4 }
 0x85f   :  { %v1780_v56 = vadd.f32 %v1778_v51, %v1776_v46  ;;  %v1785_v31 = vsub.f32 1.0, %v1783_v1  ;;  %v1787_v26 = vmul.f32 %v1783_v1, %v4266_v19 }
 0x861   :  { %3494 = vtanh.f32 %v1780_v56 }
 0x86b   :  { %v3495_v16 = vpop.eup %3494 }
 0x86c   :  { %v1786_v22 = vmul.f32 %v3495_v16, %v1785_v31  ;;  %v4385_v31 = vld [vmem:[#allocation3 + $0x8] sm:$0x3] }
 0x86d   :  { %v2032_v16 = vcombine.low %v4385_v31, %v4383_v13 }
 0x86e   :  { %v4324_v29 = vadd.f32 %v1787_v26, %v1786_v22 }
 0x86f   :  { %v2040_v28 = vrot.slane %v2032_v16, %v4021_v2 }
 0x870   :  { %1790 = vst [vmem:[#allocation3 + $0xc] sm:$0x3] %v4324_v29  ;;  %1856 = vmatmul.mubr.f32.vlgmr.msra.gmra.mrb[16].mxu0 %v4324_v29  ;;  %2881 = vmatmul.mubr.f32.vlgmr.msra.gmra.mrb[20].mxu1 %v4324_v29 }
 0x871   :  { %2915 = vmatprep.mubr.f32.mxu0 %v2031_v30  ;;  %3417 = vmatpush3.bf16.msra.mxu0 %v3414_v33 }
 0x872   :  { %3419 = vmatprep.subr.bf16.mxu0 %v3418_v36 }
 0x875   :  { %3421 = vmatpush3.bf16.msra.mxu0 %v3418_v36 }
 0x876   :  { %3423 = vmatprep.subr.bf16.mxu0 %v3422_v39 }
 0x877   :  { %v4389_v20 = vld [vmem:[#allocation3 + $0xc] sm:$0x3] }
 0x879   :  { %3425 = vmatpush3.bf16.msra.mxu0 %v3422_v39 }
 0x87a   :  { %3427 = vmatprep.subr.bf16.mxu0 %v3426_v48 }
 0x87d   :  { %3429 = vmatpush3.bf16.msra.mxu0 %v3426_v48 }
 0x87e   :  { %3431 = vmatprep.subr.bf16.mxu0 %v3430_v50 }
 0x881   :  { %3433 = vmatpush3.bf16.msra.mxu0 %v3430_v50 }
 0x882   :  { %3435 = vmatprep.subr.bf16.mxu0 %v3434_v57 }
 0x885   :  { %3437 = vmatpush3.bf16.msra.mxu0 %v3434_v57 }
 0x886   :  { %3439 = vmatprep.subr.bf16.mxu0 %v3438_v4 }
 0x889   :  { %3441 = vmatpush3.bf16.msra.mxu0 %v3438_v4 }
 0x88a   :  { %3443 = vmatprep.subr.bf16.mxu0 %v3442_v11 }
 0x88d   :  { %3445 = vmatpush3.bf16.msra.mxu0 %v3442_v11 }
 0x943   :  { %v1857_v19 = vpop.f32.mrb[16].mxu0  ;;  %v1928_v43 = vpop.f32.mrb[20].mxu1 }
 0x944   :  { %v1858_v49 = vadd.f32 %v1857_v19, %v4010_v23  ;;  %v1859_v52 = vpop.f32.mrb[17].mxu0  ;;  %v2882_v55 = vpop.f32.mrb[21].mxu1  ;;  %v1929_v58 = vadd.f32 %v1928_v43, %v4031_v42 }
 0x945   :  { %v1860_v61 = vadd.f32 %v1859_v52, %v4012_v25 }
 0x946   :  { %v1951_v3 = vrot.slane %v1929_v58, %v4021_v2 }
 0x947   :  { %v1937_v0 = vcombine.low %v1858_v49, %v1860_v61 }
 0x949   :  { %v1944_v6 = vrot.slane %v1937_v0, %v4021_v2 }
 0x94b   :  { %v1952_v9 = vcombine.low %v1944_v6, %v1951_v3  ;;  %v3552_v6 = vmov 0  }
 0x94c   :  { %3453 = vset.pattern.permute.xlu1 %v3552_v6  ;;  %3452 = vset.pattern.permute.xlu0 %v3552_v6 }
 0x94d   :  { %v1954_v15 = vadd.f32 %v1952_v9, %v1933_v12 }
 0x94f   :  { %v2384_v18 = vmul.f32 -1.442695, %v1954_v15 }
 0x951   :  { %3496 = vpow2.f32 %v2384_v18 }
 0x95b   :  { %v3497_v21 = vpop.eup %3496 }
 0x95c   :  { %v1958_v24 = vadd.f32 1.0, %v3497_v21  ;;  %v2387_v21 = vld [vmem:[#allocation4] ss:$0 sm:$0xff] }
 0x95e   :  { %3498 = vrcp.f32 %v1958_v24 }
 0x968   :  { %v3499_v23 = vpop.eup %3498 }
 0x969   :  { %v1961_v27 = vmul.f32 %v3499_v23, %v1929_v58  ;;  %v1968_v42 = vrot.slane %v3499_v23, 2 }
 0x96b   :  { %v1965_v46 = vadd.f32 %v1963_v45, %v1961_v27  ;;  %v1970_v25 = vsub.f32 1.0, %v1968_v42  ;;  %v1972_v1 = vmul.f32 %v1968_v42, %v4324_v29 }
 0x96d   :  { %3500 = vtanh.f32 %v1965_v46 }
 0x977   :  { %v3501_v51 = vpop.eup %3500 }
 0x978   :  { %v1971_v56 = vmul.f32 %v3501_v51, %v1970_v25 }
 0x97a   :  { %v1973_v14 = vadd.f32 %v1972_v1, %v1971_v56 }
 0x97c   :  { %1975 = vst [vmem:[#allocation3 + $0xe] sm:$0x3] %v1973_v14 }
 0x983   :  { %v4391_v22 = vld [vmem:[#allocation3 + $0xe] sm:$0x3] }
 0x984   :  { %v2033_v26 = vcombine.low %v4389_v20, %v4391_v22 }
 0x986   :  { %v2047_v29 = vrot.slane %v2033_v26, %v4021_v2 }
 0x988   :  { %v2048_v30 = vcombine.low %v2040_v28, %v2047_v29 }
 0x98a   :  { %2916 = vmatmul.mubr.f32.vlgmr.msra.gmra.mrb[18].mxu0 %v2048_v30 }
 0xa5d   :  { %v2917_v32 = vpop.f32.mrb[18].mxu0 }
 0xa5e   :  { %v2123_v33 = vadd.f32 %v2917_v32, %v2385_v17  ;;  %v2117_v34 = vpop.f32.mrb[19].mxu0 }
 0xa5f   :  { %v2118_v35 = vadd.f32 %v2385_v17, %v2117_v34 }
 0xa60   :  { %3502 = vtanh.f32 %v2123_v33 }
 0xa61   :  { %3504 = vtanh.f32 %v2118_v35 }
 0xa6a   :  { %v3503_v36 = vpop.eup %3502 }
 0xa6b   :  { %v3505_v38 = vpop.eup %3504  ;;  %v2154_v39 = vrot.slane %v3503_v36, %v4021_v2  ;;  %v2147_v47 = vcombine.high %v3503_v36, %v3503_v36 }
 0xa6c   :  { %v2137_v41 = vrot.slane %v3505_v38, %v4021_v2  ;;  %v2130_v44 = vcombine.high %v3505_v38, %v3505_v38 }
 0xa6d   :  { %v2183_v48 = vmul.f32 %v2386_v37, %v2154_v39  ;;  %v2162_v40 = vcombine.high %v2154_v39, %v2154_v39  ;;  %v2161_v8 = vrot.slane %v2147_v47, %v4021_v2 }
 0xa6e   :  { %v2144_v50 = vrot.slane %v2130_v44, %v4021_v2  ;;  %v2179_v57 = vmul.f32 %v2386_v37, %v2137_v41  ;;  %v2145_v62 = vcombine.high %v2137_v41, %v2137_v41 }
 0xa6f   :  { %v2200_v53 = vsel %vm2187_vm3, %v2183_v48, 0.0  ;;  %v2184_v54 = vmul.f32 %v2386_v37, %v2162_v40  ;;  %v2163_v52 = vcombine.high %v2161_v8, %v2161_v8  ;;  %v2185_v58 = vmul.f32 %v2386_v37, %v2161_v8 }
 0xa70   :  { %2201 = vadd.xlane.f32.xlu0 %v2200_v53  ;;  %v2181_v4 = vmul.f32 %v2386_v37, %v2144_v50  ;;  %v2146_v7 = vcombine.high %v2144_v50, %v2144_v50  ;;  %v2188_v11 = vsel %vm2187_vm3, %v2179_v57, 0.0  ;;  %v2180_v19 = vmul.f32 %v2386_v37, %v2145_v62 }
 0xa71   :  { %v2203_v63 = vsel %vm2187_vm3, %v2184_v54, 0.0  ;;  %v2186_v0 = vmul.f32 %v2386_v37, %v2163_v52  ;;  %v2206_v2 = vsel %vm2187_vm3, %v2185_v58, 0.0 }
 0xa72   :  { %2204 = vadd.xlane.f32.xlu1 %v2203_v63  ;;  %v2194_v43 = vsel %vm2187_vm3, %v2181_v4, 0.0  ;;  %v2182_v49 = vmul.f32 %v2386_v37, %v2146_v7  ;;  %v2191_v55 = vsel %vm2187_vm3, %v2180_v19, 0.0 }
 0xa73   :  { %v2209_v3 = vsel %vm2187_vm3, %v2186_v0, 0.0 }
 0xa74   :  { %2189 = vadd.xlane.f32.xlu0 %v2188_v11  ;;  %v2197_v61 = vsel %vm2187_vm3, %v2182_v49, 0.0 }
 0xa76   :  { %2195 = vadd.xlane.f32.xlu1 %v2194_v43 }
 0xa78   :  { %2192 = vadd.xlane.f32.xlu0 %v2191_v55 }
 0xa7a   :  { %2198 = vadd.xlane.f32.xlu1 %v2197_v61 }
 0xa7c   :  { %2207 = vadd.xlane.f32.xlu0 %v2206_v2 }
 0xa7e   :  { %2210 = vadd.xlane.f32.xlu1 %v2209_v3 }
 0xafd   :  { %v2202_v9 = vpop.xlane.xlu0 %2201 }
 0xafe   :  { %v2223_v42 = vadd.f32 %v2387_v21, %v2202_v9 }
 0xaff   :  { %v2205_v12 = vpop.xlane.xlu1 %2204 }
 0xb00   :  { %v2224_v45 = vadd.f32 %v2387_v21, %v2205_v12  ;;  %v2232_v32 = vsel %vm2227_vm4, %v2223_v42, -inf }
 0xb01   :  { %v2190_v15 = vpop.xlane.xlu0 %2189 }
 0xb02   :  { %v2219_v46 = vadd.f32 %v2387_v21, %v2190_v15  ;;  %v2234_v26 = vsel %vm2227_vm4, %v2224_v45, -inf }
 0xb03   :  { %v2196_v18 = vpop.xlane.xlu1 %2195 }
 0xb04   :  { %v2221_v51 = vadd.f32 %v2387_v21, %v2196_v18  ;;  %v2228_v28 = vsel %vm2227_vm4, %v2219_v46, -inf }
 0xb05   :  { %v2193_v24 = vpop.xlane.xlu0 %2192  ;;  %v2233_v36 = vmax.f32 %v2228_v28, %v2232_v32 }
 0xb06   :  { %v2220_v23 = vadd.f32 %v2387_v21, %v2193_v24  ;;  %v2230_v33 = vsel %vm2227_vm4, %v2221_v51, -inf }
 0xb07   :  { %v2199_v27 = vpop.xlane.xlu1 %2198 }
 0xb08   :  { %v2229_v56 = vsel %vm2227_vm4, %v2220_v23, -inf  ;;  %v2222_v1 = vadd.f32 %v2387_v21, %v2199_v27 }
 0xb09   :  { %v2208_v25 = vpop.xlane.xlu0 %2207  ;;  %v2235_v17 = vmax.f32 %v2229_v56, %v2234_v26 }
 0xb0a   :  { %v2225_v14 = vadd.f32 %v2387_v21, %v2208_v25  ;;  %v2231_v34 = vsel %vm2227_vm4, %v2222_v1, -inf }
 0xb0b   :  { %v2211_v16 = vpop.xlane.xlu1 %2210  ;;  %v2240_v39 = vmax.f32 %v2233_v36, %v2235_v17 }
 0xb0c   :  { %v2236_v29 = vsel %vm2227_vm4, %v2225_v14, -inf  ;;  %v2226_v30 = vadd.f32 %v2387_v21, %v2211_v16 }
 0xb0d   :  { %v2237_v37 = vmax.f32 %v2230_v33, %v2236_v29 }
 0xb0e   :  { %v2238_v35 = vsel %vm2227_vm4, %v2226_v30, -inf }
 0xb0f   :  { %v2239_v38 = vmax.f32 %v2231_v34, %v2238_v35 }
 0xb11   :  { %v2241_v41 = vmax.f32 %v2237_v37, %v2239_v38 }
 0xb13   :  { %v2242_v44 = vmax.f32 %v2240_v39, %v2241_v41 }
 0xb15   :  { %v2245_v48 = vsub.f32 %v2221_v51, %v2242_v44  ;;  %v2243_v40 = vsub.f32 %v2219_v46, %v2242_v44  ;;  %v2244_v47 = vsub.f32 %v2220_v23, %v2242_v44  ;;  %v2246_v50 = vsub.f32 %v2222_v1, %v2242_v44 }
 0xb16   :  { %v2247_v57 = vsub.f32 %v2223_v42, %v2242_v44  ;;  %v2248_v63 = vsub.f32 %v2224_v45, %v2242_v44  ;;  %v2249_v7 = vsub.f32 %v2225_v14, %v2242_v44  ;;  %v2250_v11 = vsub.f32 %v2226_v30, %v2242_v44 }
 0xb17   :  { %v2255_v53 = vmul.f32 1.442695, %v2245_v48  ;;  %v2251_v54 = vmul.f32 1.442695, %v2243_v40  ;;  %v2253_v62 = vmul.f32 1.442695, %v2244_v47 }
 0xb18   :  { %v2257_v4 = vmul.f32 1.442695, %v2246_v50  ;;  %v2259_v8 = vmul.f32 1.442695, %v2247_v57  ;;  %v2261_v19 = vmul.f32 1.442695, %v2248_v63 }
 0xb19   :  { %3506 = vpow2.f32 %v2255_v53  ;;  %v2263_v43 = vmul.f32 1.442695, %v2249_v7  ;;  %v2265_v49 = vmul.f32 1.442695, %v2250_v11 }
 0xb1a   :  { %3508 = vpow2.f32 %v2251_v54 }
 0xb1b   :  { %3510 = vpow2.f32 %v2253_v62 }
 0xb1c   :  { %3512 = vpow2.f32 %v2257_v4 }
 0xb1d   :  { %3514 = vpow2.f32 %v2259_v8 }
 0xb1e   :  { %3516 = vpow2.f32 %v2261_v19 }
 0xb1f   :  { %3518 = vpow2.f32 %v2263_v43 }
 0xb20   :  { %3520 = vpow2.f32 %v2265_v49 }
 0xb23   :  { %v3507_v52 = vpop.eup %3506 }
 0xb24   :  { %v3509_v55 = vpop.eup %3508  ;;  %v2270_v6 = vsel %vm2227_vm4, %v3507_v52, 0.0 }
 0xb25   :  { %v3511_v58 = vpop.eup %3510  ;;  %v2267_v61 = vsel %vm2227_vm4, %v3509_v55, 0.0 }
 0xb26   :  { %v2268_v0 = vsel %vm2227_vm4, %v3511_v58, 0.0  ;;  %v3513_v2 = vpop.eup %3512 }
 0xb27   :  { %v2269_v3 = vadd.f32 %v2268_v0, %v2267_v61  ;;  %v3515_v9 = vpop.eup %3514  ;;  %v2272_v15 = vsel %vm2227_vm4, %v3513_v2, 0.0 }
 0xb28   :  { %v3517_v18 = vpop.eup %3516  ;;  %v2274_v24 = vsel %vm2227_vm4, %v3515_v9, 0.0 }
 0xb29   :  { %v2271_v12 = vadd.f32 %v2270_v6, %v2269_v3  ;;  %v3519_v23 = vpop.eup %3518  ;;  %v2276_v45 = vsel %vm2227_vm4, %v3517_v18, 0.0 }
 0xb2a   :  { %v3521_v46 = vpop.eup %3520  ;;  %v2278_v25 = vsel %vm2227_vm4, %v3519_v23, 0.0 }
 0xb2b   :  { %v2273_v21 = vadd.f32 %v2272_v15, %v2271_v12  ;;  %v2280_v56 = vsel %vm2227_vm4, %v3521_v46, 0.0 }
 0xb2d   :  { %v2275_v27 = vadd.f32 %v2274_v24, %v2273_v21 }
 0xb2f   :  { %v2277_v42 = vadd.f32 %v2276_v45, %v2275_v27 }
 0xb31   :  { %v2279_v51 = vadd.f32 %v2278_v25, %v2277_v42 }
 0xb33   :  { %v2281_v1 = vadd.f32 %v2280_v56, %v2279_v51 }
 0xb35   :  { %3522 = vrcp.f32 %v2281_v1 }
 0xb3f   :  { %v3523_v14 = vpop.eup %3522 }
 0xb40   :  { %v2284_v16 = vmul.f32 %v3523_v14, %v3511_v58  ;;  %v2283_v26 = vmul.f32 %v3523_v14, %v3509_v55  ;;  %v2285_v28 = vmul.f32 %v3523_v14, %v3507_v52  ;;  %v2286_v29 = vmul.f32 %v3523_v14, %v3513_v2 }
 0xb41   :  { %v2287_v30 = vmul.f32 %v3523_v14, %v3515_v9  ;;  %v2288_v17 = vmul.f32 %v3523_v14, %v3517_v18  ;;  %v2289_v32 = vmul.f32 %v3523_v14, %v3519_v23  ;;  %v2290_v33 = vmul.f32 %v3523_v14, %v3521_v46 }
 0xb42   :  { %2298 = vperm.xlu1 %3453, %v2284_v16   ;;  %2293 = vperm.xlu0 %3452, %v2283_v26  }
 0xb46   :  { %2303 = vperm.xlu1 %3453, %v2285_v28  }
 0xb4a   :  { %2308 = vperm.xlu1 %3453, %v2286_v29  }
 0xb4e   :  { %2313 = vperm.xlu1 %3453, %v2287_v30  }
 0xb52   :  { %2318 = vperm.xlu1 %3453, %v2288_v17  }
 0xb56   :  { %2323 = vperm.xlu1 %3453, %v2289_v32  }
 0xb5a   :  { %2328 = vperm.xlu1 %3453, %v2290_v33  }
 0xbc1   :  { %v2299_v34 = vpop.permute.xlu1 %2298  ;;  %v2294_v36 = vpop.permute.xlu0 %2293 }
 0xbc2   :  { %v2332_v38 = vmul.f32 %v2299_v34, %v4311_v5  ;;  %v2331_v39 = vmul.f32 %v2294_v36, %v4317_v59 }
 0xbc4   :  { %v2341_v48 = vsel %vm2339_vm5, %v2332_v38, 0.0  ;;  %v2340_v40 = vsel %vm2339_vm5, %v2331_v39, 0.0 }
 0xbc5   :  { %v2304_v35 = vpop.permute.xlu1 %2303  ;;  %v2342_v54 = vadd.f32 %v2341_v48, %v2340_v40 }
 0xbc6   :  { %v2333_v41 = vmul.f32 %v2304_v35, %v4313_v10 }
 0xbc8   :  { %v2343_v50 = vsel %vm2339_vm5, %v2333_v41, 0.0 }
 0xbc9   :  { %v2309_v37 = vpop.permute.xlu1 %2308  ;;  %v2344_v62 = vadd.f32 %v2343_v50, %v2342_v54 }
 0xbca   :  { %v2334_v47 = vmul.f32 %v2309_v37, %v4309_v60 }
 0xbcc   :  { %v2345_v5 = vsel %vm2339_vm5, %v2334_v47, 0.0 }
 0xbcd   :  { %v2314_v44 = vpop.permute.xlu1 %2313  ;;  %v2346_v63 = vadd.f32 %v2345_v5, %v2344_v62 }
 0xbce   :  { %v2335_v53 = vmul.f32 %v2314_v44, %v4385_v31 }
 0xbd0   :  { %v2347_v10 = vsel %vm2339_vm5, %v2335_v53, 0.0 }
 0xbd1   :  { %v2319_v57 = vpop.permute.xlu1 %2318  ;;  %v2348_v60 = vadd.f32 %v2347_v10, %v2346_v63 }
 0xbd2   :  { %v2336_v59 = vmul.f32 %v2319_v57, %v4383_v13 }
 0xbd4   :  { %v2349_v7 = vsel %vm2339_vm5, %v2336_v59, 0.0 }
 0xbd5   :  { %v2324_v4 = vpop.permute.xlu1 %2323  ;;  %v2350_v19 = vadd.f32 %v2349_v7, %v2348_v60 }
 0xbd6   :  { %v2337_v8 = vmul.f32 %v2324_v4, %v4389_v20 }
 0xbd8   :  { %v2351_v11 = vsel %vm2339_vm5, %v2337_v8, 0.0 }
 0xbd9   :  { %v2329_v31 = vpop.permute.xlu1 %2328  ;;  %v2352_v49 = vadd.f32 %v2351_v11, %v2350_v19 }
 0xbda   :  { %v2338_v43 = vmul.f32 %v2329_v31, %v4391_v22 }
 0xbdc   :  { %v2353_v13 = vsel %vm2339_vm5, %v2338_v43, 0.0 }
 0xbdd   :  { %v2354_v52 = vadd.f32 %v2353_v13, %v2352_v49 }
 0xbdf   :  { %2355 = vst [vmem:[#allocation5] sm:$0x3] %v2354_v52 }
 0xbe0   :  { %3535 = shalt.err (!%p3532_p4)
}
 0xbe1   :  { %s3536_s2 = scalar_lea.hbm %s4470_s11, 32 }
 0xbe2   :  { %p3537_p5 = scmp.ne.s32.totalorder %s4470_s11, %s3536_s2  ;;  %p3540_p6 = scmp.lt.u32.totalorder %s3536_s2, %s4470_s11 }
 0xbe4   :  { %p3542_p7 = pnand %p3540_p6, %p3537_p5 }
 0xbe6   :  { %3545 = shalt.err (!%p3542_p7)
}
 0xbe7   :  { %2365 = dma.vmem_to_hbm [thread:$0]  %s2363_s9, 32, %s4470_s11, [#allocation6]  }
 0xbe8   :  { %3546 = dma.done.wait [#allocation6], 32  }
 0xbe9   :  { %3547 = vsyncadd [#allocation6], 4294967264 }
 0xbea   :  { %2369 = vsyncpa [#allocation6], 1 }

</bundles_post_ra>
